<compile_context>
chip_gen: v6e
topology: v6e:2x2x1
jax: 0.10.0
libtpu: 0.0.40
codegen_flags: <defaults>
</compile_context>

<pallas_src>
import jax
import jax.numpy as jnp
from jax.experimental import pallas as pl
from jax.experimental.pallas import tpu as pltpu

C_PAD = 128          # lane padding for every channel-like dimension
K1_PAD = 32          # conv1 im2col K: 1*5*5  = 25  -> 32
K2_PAD = 256         # conv2 im2col K: 10*5*5 = 250 -> 256


# ----------------------------- Pallas kernels ------------------------------

def conv_pool_relu_kernel(p_ref, w_ref, b_ref, o_ref):
    """Fused conv-as-matmul + 2x2 maxpool + bias + ReLU.

    p_ref: (4, TM, K)  im2col patches (bf16), grouped by pooling position
    w_ref: (K, C)      flattened conv weights (bf16), K order = (cin, ky, kx)
    b_ref: (1, C)      conv bias (f32)
    o_ref: (TM, C)     relu(max over the 4 pool positions + bias) (bf16)
    """
    g, tm, k = p_ref.shape
    c = w_ref.shape[1]
    # One long-M matmul instead of 4 small ones: single RHS staging on the MXU.
    p = p_ref[...].reshape(g * tm, k)
    y = jnp.dot(p, w_ref[...], preferred_element_type=jnp.float32)
    y = y.reshape(g, tm, c)
    # Pool-max over the 4 window positions (cheap VPU work); bias added once.
    y = jnp.max(y, axis=0) + b_ref[...]
    o_ref[...] = jnp.maximum(y, 0.0).astype(o_ref.dtype)


def mlp_softmax_kernel(x_ref, w1_ref, b1_ref, w2_ref, b2_ref, o_ref):
    """softmax(relu(x @ W1 + b1) @ W2 + b2), all lane dims padded to 128.

    Padded hidden/output lanes carry zero weights; padded logit lanes carry a
    -1e30 bias so they vanish under the softmax (exp -> 0).
    """
    h = jnp.dot(x_ref[...], w1_ref[...], preferred_element_type=jnp.float32)
    h = jnp.maximum(h + b1_ref[...], 0.0)
    logits = jnp.dot(h.astype(w2_ref.dtype), w2_ref[...],
                     preferred_element_type=jnp.float32) + b2_ref[...]
    m = jnp.max(logits, axis=-1, keepdims=True)
    e = jnp.exp(logits - m)
    s = jnp.sum(e, axis=-1, keepdims=True)
    o_ref[...] = e * pl.reciprocal(s, approx=True)      # EUP divide


# ----------------------------- pallas_call wrappers ------------------------

def conv_pool_relu(patches, w_mat, b_row, *, tm=512):
    g, m, k = patches.shape
    c = w_mat.shape[1]
    tm = min(tm, m)
    grid_m = pl.cdiv(m, tm)

    p_kwargs = {}
    if grid_m >= 4:
        # deeper input buffering only pays once there are enough grid steps
        p_kwargs = dict(pipeline_mode=pl.Buffered(3))
    p_spec = pl.BlockSpec((g, tm, k), lambda i: (0, i, 0), **p_kwargs)

    cost = pl.CostEstimate(
        flops=2 * g * m * k * c,
        transcendentals=0,
        bytes_accessed=int(patches.size * patches.dtype.itemsize
                           + w_mat.size * w_mat.dtype.itemsize
                           + b_row.size * 4 + m * c * 2),
    )
    return pl.pallas_call(
        conv_pool_relu_kernel,
        out_shape=jax.ShapeDtypeStruct((m, c), jnp.bfloat16),
        grid=(grid_m,),
        in_specs=[
            p_spec,
            pl.BlockSpec((k, c), lambda i: (0, 0)),
            pl.BlockSpec((1, c), lambda i: (0, 0)),
        ],
        out_specs=pl.BlockSpec((tm, c), lambda i: (i, 0)),
        compiler_params=pltpu.CompilerParams(
            dimension_semantics=("parallel",)),
        cost_estimate=cost,
    )(patches, w_mat, b_row)


def mlp_softmax(x, w1, b1, w2, b2, *, tn=256):
    n, d = x.shape
    h = w1.shape[1]
    o = w2.shape[1]
    tn = min(tn, n)
    grid_n = pl.cdiv(n, tn)

    cost = pl.CostEstimate(
        flops=2 * n * (d * h + h * o),
        transcendentals=n * o,
        bytes_accessed=int(x.size * x.dtype.itemsize
                           + (w1.size + w2.size) * 2
                           + (b1.size + b2.size) * 4 + n * o * 4),
    )
    return pl.pallas_call(
        mlp_softmax_kernel,
        out_shape=jax.ShapeDtypeStruct((n, o), jnp.float32),
        grid=(grid_n,),
        in_specs=[
            pl.BlockSpec((tn, d), lambda i: (i, 0)),
            pl.BlockSpec((d, h), lambda i: (0, 0)),
            pl.BlockSpec((1, h), lambda i: (0, 0)),
            pl.BlockSpec((h, o), lambda i: (0, 0)),
            pl.BlockSpec((1, o), lambda i: (0, 0)),
        ],
        out_specs=pl.BlockSpec((tn, o), lambda i: (i, 0)),
        compiler_params=pltpu.CompilerParams(
            dimension_semantics=("parallel",)),
        cost_estimate=cost,
    )(x, w1, b1, w2, b2)


# ----------------------------- host-side glue (im2col / packing) -----------

def _patches_pool_groups(x_nhwc, ksize, k_pad):
    """Build (4, N*Hp*Wp, k_pad) im2col patch groups for conv(k) + 2x2 maxpool."""
    n, hh, ww, cin = x_nhwc.shape
    ho, wo = hh - ksize + 1, ww - ksize + 1
    rows = []
    for ky in range(ksize):
        cols = [x_nhwc[:, ky:ky + ho, kx:kx + wo, :] for kx in range(ksize)]
        rows.append(jnp.stack(cols, axis=-1))          # (N,Ho,Wo,Cin,kx)
    p = jnp.stack(rows, axis=-2)                       # (N,Ho,Wo,Cin,ky,kx)
    k = cin * ksize * ksize
    p = p.reshape(n, ho, wo, k)                        # K order = (cin, ky, kx)
    hp, wp = ho // 2, wo // 2
    p = p.reshape(n, hp, 2, wp, 2, k)
    p = jnp.transpose(p, (2, 4, 0, 1, 3, 5))           # (di, dj, N, Hp, Wp, K)
    p = p.reshape(4, n * hp * wp, k)
    if k_pad > k:
        p = jnp.pad(p, ((0, 0), (0, 0), (0, k_pad - k)))
    return p, (n, hp, wp)


def _pad2(a, rows, cols):
    return jnp.pad(a, ((0, rows - a.shape[0]), (0, cols - a.shape[1])))


def cnn_forward(x_nchw, params):
    x = jnp.transpose(x_nchw, (0, 2, 3, 1)).astype(jnp.bfloat16)     # NHWC bf16

    # --- conv1 (1->10, k=5) + maxpool2 + relu; output channels padded to 128
    p1, (n, hp1, wp1) = _patches_pool_groups(x, 5, K1_PAD)           # (4, N*144, 32)
    w1 = _pad2(params["conv1_w"].reshape(10, 25).T, K1_PAD, C_PAD)
    b1 = _pad2(params["conv1_b"].reshape(1, 10), 1, C_PAD)
    y1 = conv_pool_relu(p1, w1.astype(jnp.bfloat16), b1)             # (N*144, 128) bf16
    # only the first 10 lanes are real channels; slice before conv2 im2col
    y1 = y1.reshape(n, hp1, wp1, C_PAD)[..., :10]                    # (N, 12, 12, 10)

    # --- conv2 (10->20, k=5) + Dropout2d (identity, eval) + maxpool2 + relu
    p2, (_, hp2, wp2) = _patches_pool_groups(y1, 5, K2_PAD)          # (4, N*16, 256)
    w2 = _pad2(params["conv2_w"].reshape(20, 250).T, K2_PAD, C_PAD)
    b2 = _pad2(params["conv2_b"].reshape(1, 20), 1, C_PAD)
    y2 = conv_pool_relu(p2, w2.astype(jnp.bfloat16), b2)             # (N*16, 128) bf16

    # --- flatten.  y2 rows are (n, h, w) with 128 padded channels on the lanes.
    # PyTorch's x.view(-1, 320) flattens NCHW; instead of transposing/slicing
    # the activation we permute + zero-pad fc1's weights to this padded NHWC
    # layout, so the reshape below is pure metadata and the FC head is fused.
    flat = y2.reshape(n, hp2 * wp2 * C_PAD)                          # (N, 2048)

    fw1 = params["fc1_w"].reshape(50, 20, hp2, wp2)                  # (j, c, h, w)
    fw1 = jnp.transpose(fw1, (2, 3, 1, 0))                           # (h, w, c, j)
    fw1p = jnp.zeros((hp2, wp2, C_PAD, C_PAD), jnp.float32)
    fw1p = fw1p.at[:, :, :20, :50].set(fw1)
    fw1p = fw1p.reshape(hp2 * wp2 * C_PAD, C_PAD)                    # (2048, 128)
    fb1 = _pad2(params["fc1_b"].reshape(1, 50), 1, C_PAD)

    fw2p = jnp.zeros((C_PAD, C_PAD), jnp.float32)
    fw2p = fw2p.at[:50, :10].set(params["fc2_w"].T)
    # padded logit lanes get a huge negative bias -> exp() == 0 under softmax
    fb2 = jnp.full((1, C_PAD), -1e30, jnp.float32)
    fb2 = fb2.at[0, :10].set(params["fc2_b"])

    probs = mlp_softmax(flat, fw1p.astype(jnp.bfloat16), fb1,
                        fw2p.astype(jnp.bfloat16), fb2)              # (N, 128) f32
    return probs[:, :10]


# ----------------------------- pure-JAX reference ---------------------------

def reference_forward(x_nchw, params):
    """Independent f32 reference matching the PyTorch module (eval mode)."""
    def conv(x, w, b):
        y = jax.lax.conv_general_dilated(
            x, w, window_strides=(1, 1), padding="VALID",
            dimension_numbers=("NCHW", "OIHW", "NCHW"))
        return y + b.reshape(1, -1, 1, 1)

    def maxpool2(x):
        return jax.lax.reduce_window(
            x, -jnp.inf, jax.lax.max, (1, 1, 2, 2), (1, 1, 2, 2), "VALID")

    x = x_nchw.astype(jnp.float32)
    y = jnp.maximum(maxpool2(conv(x, params["conv1_w"], params["conv1_b"])), 0.0)
    y = jnp.maximum(maxpool2(conv(y, params["conv2_w"], params["conv2_b"])), 0.0)
    flat = y.reshape(y.shape[0], -1)                                 # NCHW flatten
    h = jnp.maximum(flat @ params["fc1_w"].T + params["fc1_b"], 0.0)
    logits = h @ params["fc2_w"].T + params["fc2_b"]
    return jax.nn.softmax(logits, axis=-1)


# ----------------------------- deterministic params ------------------------

def init_params(key):
    ks = jax.random.split(key, 8)

    def u(k, shape, fan_in):
        bound = 1.0 / jnp.sqrt(jnp.float32(fan_in))
        return jax.random.uniform(k, shape, jnp.float32, -bound, bound)

    return {
        "conv1_w": u(ks[0], (10, 1, 5, 5), 25),
        "conv1_b": u(ks[1], (10,), 25),
        "conv2_w": u(ks[2], (20, 10, 5, 5), 250),
        "conv2_b": u(ks[3], (20,), 250),
        "fc1_w":   u(ks[4], (50, 320), 320),
        "fc1_b":   u(ks[5], (50,), 320),
        "fc2_w":   u(ks[6], (10, 50), 50),
        "fc2_b":   u(ks[7], (10,), 50),
    }


# ----------------------------- main -----------------------------------------

if __name__ == "__main__":
    key = jax.random.PRNGKey(0)
    k_params, k_x = jax.random.split(key)
    params = init_params(k_params)

    # Module implies MNIST geometry: (N, 1, 28, 28) -> flatten 20*4*4 = 320.
    x = jax.random.normal(k_x, (2, 1, 28, 28), dtype=jnp.float32)

    out = jax.jit(cnn_forward)(x, params)
    out = jax.block_until_ready(out)

    ref = reference_forward(x, params)

    assert out.shape == (2, 10)
    assert bool(jnp.all(jnp.isfinite(out)))
    # softmax rows sum to ~1 (approx EUP reciprocal + bf16 MXU operands)
    assert bool(jnp.allclose(jnp.sum(out, axis=-1), 1.0, atol=1e-2))
    # matches the independent f32 reference within bf16 tolerance
    assert bool(jnp.max(jnp.abs(out - ref)) < 5e-2)

    print("KERNEL_OK")
</pallas_src>

<mosaic_0001>
module attributes {stable_mosaic.version = 11 : i64} {
  func.func @conv_pool_relu_kernel(%arg0: i32, %arg1: memref<4x288x32xbf16, #tpu.memory_space<vmem>>, %arg2: memref<32x128xbf16, #tpu.memory_space<vmem>>, %arg3: memref<1x128xf32, #tpu.memory_space<vmem>>, %arg4: memref<288x128xbf16, #tpu.memory_space<vmem>>) attributes {dimension_semantics = [#tpu.dimension_semantics<parallel>], iteration_bounds = array<i64: 1>, scalar_prefetch = 0 : i64, scratch_operands = 0 : i64, tpu.core_type = #tpu.core_type<tc>, window_params = [{transform_indices = @transform_0, window_bounds = array<i64: 4, 288, 32>}, {pipeline_mode = #tpu.pipeline_mode<synchronous>, transform_indices = @transform_1, window_bounds = array<i64: 32, 128>}, {pipeline_mode = #tpu.pipeline_mode<synchronous>, transform_indices = @transform_2, window_bounds = array<i64: 1, 128>}, {transform_indices = @transform_3, window_bounds = array<i64: 288, 128>}]} {
    %c0 = arith.constant 0 : index
    %c0_0 = arith.constant 0 : index
    %c0_1 = arith.constant 0 : index
    %0 = vector.load %arg1[%c0, %c0_0, %c0_1] : memref<4x288x32xbf16, #tpu.memory_space<vmem>>, vector<4x288x32xbf16>
    %1 = vector.shape_cast %0 : vector<4x288x32xbf16> to vector<1152x32xbf16>
    %c0_2 = arith.constant 0 : index
    %c0_3 = arith.constant 0 : index
    %2 = vector.load %arg2[%c0_2, %c0_3] : memref<32x128xbf16, #tpu.memory_space<vmem>>, vector<32x128xbf16>
    %cst = arith.constant dense<0.000000e+00> : vector<1152x128xf32>
    %3 = tpu.matmul %1, %2, %cst {dimension_numbers = #tpu.dot_dimension_numbers<[1], [0], [0], [1], [0, 0, 1, 1], [], []>} : vector<1152x32xbf16>, vector<32x128xbf16>, vector<1152x128xf32> -> vector<1152x128xf32>
    %4 = vector.shape_cast %3 : vector<1152x128xf32> to vector<4x288x128xf32>
    %cst_4 = arith.constant dense<0xFF800000> : vector<288x128xf32>
    %5 = vector.multi_reduction <maximumf>, %4, %cst_4 [0] : vector<4x288x128xf32> to vector<288x128xf32>
    %c0_5 = arith.constant 0 : index
    %c0_6 = arith.constant 0 : index
    %6 = vector.load %arg3[%c0_5, %c0_6] : memref<1x128xf32, #tpu.memory_space<vmem>>, vector<1x128xf32>
    %7 = vector.broadcast %6 : vector<1x128xf32> to vector<288x128xf32>
    %8 = arith.addf %5, %7 : vector<288x128xf32>
    %cst_7 = arith.constant 0.000000e+00 : f32
    %9 = vector.broadcast %cst_7 : f32 to vector<288x128xf32>
    %10 = arith.maximumf %8, %9 : vector<288x128xf32>
    %11 = arith.truncf %10 : vector<288x128xf32> to vector<288x128xbf16>
    %c0_8 = arith.constant 0 : index
    %c0_9 = arith.constant 0 : index
    %12 = vector.load %arg4[%c0_8, %c0_9] : memref<288x128xbf16, #tpu.memory_space<vmem>>, vector<288x128xbf16>
    tpu.vector_store %arg4[%c0_8, %c0_9], %11 {strides = array<i32>} : memref<288x128xbf16, #tpu.memory_space<vmem>>, vector<288x128xbf16>,
    return
  }
  func.func @transform_0(%arg0: i32) -> (i32, i32, i32) {
    %c0_i32 = arith.constant 0 : i32
    %c0_i32_0 = arith.constant 0 : i32
    %c0_i32_1 = arith.constant 0 : i32
    return %c0_i32, %arg0, %c0_i32_0 : i32, i32, i32
  }
  func.func @transform_1(%arg0: i32) -> (i32, i32) {
    %c0_i32 = arith.constant 0 : i32
    %c0_i32_0 = arith.constant 0 : i32
    %c0_i32_1 = arith.constant 0 : i32
    return %c0_i32, %c0_i32_0 : i32, i32
  }
  func.func @transform_2(%arg0: i32) -> (i32, i32) {
    %c0_i32 = arith.constant 0 : i32
    %c0_i32_0 = arith.constant 0 : i32
    %c0_i32_1 = arith.constant 0 : i32
    return %c0_i32, %c0_i32_0 : i32, i32
  }
  func.func @transform_3(%arg0: i32) -> (i32, i32) {
    %c0_i32 = arith.constant 0 : i32
    %c0_i32_0 = arith.constant 0 : i32
    return %arg0, %c0_i32 : i32, i32
  }
}

module attributes {stable_mosaic.version = 11 : i64} {
  func.func @conv_pool_relu_kernel(%arg0: i32, %arg1: memref<4x32x256xbf16, #tpu.memory_space<vmem>>, %arg2: memref<256x128xbf16, #tpu.memory_space<vmem>>, %arg3: memref<1x128xf32, #tpu.memory_space<vmem>>, %arg4: memref<32x128xbf16, #tpu.memory_space<vmem>>) attributes {dimension_semantics = [#tpu.dimension_semantics<parallel>], iteration_bounds = array<i64: 1>, scalar_prefetch = 0 : i64, scratch_operands = 0 : i64, tpu.core_type = #tpu.core_type<tc>, window_params = [{transform_indices = @transform_0, window_bounds = array<i64: 4, 32, 256>}, {pipeline_mode = #tpu.pipeline_mode<synchronous>, transform_indices = @transform_1, window_bounds = array<i64: 256, 128>}, {pipeline_mode = #tpu.pipeline_mode<synchronous>, transform_indices = @transform_2, window_bounds = array<i64: 1, 128>}, {transform_indices = @transform_3, window_bounds = array<i64: 32, 128>}]} {
    %c0 = arith.constant 0 : index
    %c0_0 = arith.constant 0 : index
    %c0_1 = arith.constant 0 : index
    %0 = vector.load %arg1[%c0, %c0_0, %c0_1] : memref<4x32x256xbf16, #tpu.memory_space<vmem>>, vector<4x32x256xbf16>
    %1 = vector.shape_cast %0 : vector<4x32x256xbf16> to vector<128x256xbf16>
    %c0_2 = arith.constant 0 : index
    %c0_3 = arith.constant 0 : index
    %2 = vector.load %arg2[%c0_2, %c0_3] : memref<256x128xbf16, #tpu.memory_space<vmem>>, vector<256x128xbf16>
    %cst = arith.constant dense<0.000000e+00> : vector<128x128xf32>
    %3 = tpu.matmul %1, %2, %cst {dimension_numbers = #tpu.dot_dimension_numbers<[1], [0], [0], [1], [0, 0, 1, 1], [], []>} : vector<128x256xbf16>, vector<256x128xbf16>, vector<128x128xf32> -> vector<128x128xf32>
    %4 = vector.shape_cast %3 : vector<128x128xf32> to vector<4x32x128xf32>
    %cst_4 = arith.constant dense<0xFF800000> : vector<32x128xf32>
    %5 = vector.multi_reduction <maximumf>, %4, %cst_4 [0] : vector<4x32x128xf32> to vector<32x128xf32>
    %c0_5 = arith.constant 0 : index
    %c0_6 = arith.constant 0 : index
    %6 = vector.load %arg3[%c0_5, %c0_6] : memref<1x128xf32, #tpu.memory_space<vmem>>, vector<1x128xf32>
    %7 = vector.broadcast %6 : vector<1x128xf32> to vector<32x128xf32>
    %8 = arith.addf %5, %7 : vector<32x128xf32>
    %cst_7 = arith.constant 0.000000e+00 : f32
    %9 = vector.broadcast %cst_7 : f32 to vector<32x128xf32>
    %10 = arith.maximumf %8, %9 : vector<32x128xf32>
    %11 = arith.truncf %10 : vector<32x128xf32> to vector<32x128xbf16>
    %c0_8 = arith.constant 0 : index
    %c0_9 = arith.constant 0 : index
    %12 = vector.load %arg4[%c0_8, %c0_9] : memref<32x128xbf16, #tpu.memory_space<vmem>>, vector<32x128xbf16>
    tpu.vector_store %arg4[%c0_8, %c0_9], %11 {strides = array<i32>} : memref<32x128xbf16, #tpu.memory_space<vmem>>, vector<32x128xbf16>,
    return
  }
  func.func @transform_0(%arg0: i32) -> (i32, i32, i32) {
    %c0_i32 = arith.constant 0 : i32
    %c0_i32_0 = arith.constant 0 : i32
    %c0_i32_1 = arith.constant 0 : i32
    return %c0_i32, %arg0, %c0_i32_0 : i32, i32, i32
  }
  func.func @transform_1(%arg0: i32) -> (i32, i32) {
    %c0_i32 = arith.constant 0 : i32
    %c0_i32_0 = arith.constant 0 : i32
    %c0_i32_1 = arith.constant 0 : i32
    return %c0_i32, %c0_i32_0 : i32, i32
  }
  func.func @transform_2(%arg0: i32) -> (i32, i32) {
    %c0_i32 = arith.constant 0 : i32
    %c0_i32_0 = arith.constant 0 : i32
    %c0_i32_1 = arith.constant 0 : i32
    return %c0_i32, %c0_i32_0 : i32, i32
  }
  func.func @transform_3(%arg0: i32) -> (i32, i32) {
    %c0_i32 = arith.constant 0 : i32
    %c0_i32_0 = arith.constant 0 : i32
    return %arg0, %c0_i32 : i32, i32
  }
}

module attributes {stable_mosaic.version = 11 : i64} {
  func.func @mlp_softmax_kernel(%arg0: i32, %arg1: memref<2x2048xbf16, #tpu.memory_space<vmem>>, %arg2: memref<2048x128xbf16, #tpu.memory_space<vmem>>, %arg3: memref<1x128xf32, #tpu.memory_space<vmem>>, %arg4: memref<128x128xbf16, #tpu.memory_space<vmem>>, %arg5: memref<1x128xf32, #tpu.memory_space<vmem>>, %arg6: memref<2x128xf32, #tpu.memory_space<vmem>>) attributes {dimension_semantics = [#tpu.dimension_semantics<parallel>], iteration_bounds = array<i64: 1>, scalar_prefetch = 0 : i64, scratch_operands = 0 : i64, tpu.core_type = #tpu.core_type<tc>, window_params = [{transform_indices = @transform_0, window_bounds = array<i64: 2, 2048>}, {pipeline_mode = #tpu.pipeline_mode<synchronous>, transform_indices = @transform_1, window_bounds = array<i64: 2048, 128>}, {pipeline_mode = #tpu.pipeline_mode<synchronous>, transform_indices = @transform_2, window_bounds = array<i64: 1, 128>}, {pipeline_mode = #tpu.pipeline_mode<synchronous>, transform_indices = @transform_3, window_bounds = array<i64: 128, 128>}, {pipeline_mode = #tpu.pipeline_mode<synchronous>, transform_indices = @transform_4, window_bounds = array<i64: 1, 128>}, {transform_indices = @transform_5, window_bounds = array<i64: 2, 128>}]} {
    %c0 = arith.constant 0 : index
    %c0_0 = arith.constant 0 : index
    %0 = vector.load %arg1[%c0, %c0_0] : memref<2x2048xbf16, #tpu.memory_space<vmem>>, vector<2x2048xbf16>
    %c0_1 = arith.constant 0 : index
    %c0_2 = arith.constant 0 : index
    %1 = vector.load %arg2[%c0_1, %c0_2] : memref<2048x128xbf16, #tpu.memory_space<vmem>>, vector<2048x128xbf16>
    %cst = arith.constant dense<0.000000e+00> : vector<2x128xf32>
    %2 = tpu.matmul %0, %1, %cst {dimension_numbers = #tpu.dot_dimension_numbers<[1], [0], [0], [1], [0, 0, 1, 1], [], []>} : vector<2x2048xbf16>, vector<2048x128xbf16>, vector<2x128xf32> -> vector<2x128xf32>
    %c0_3 = arith.constant 0 : index
    %c0_4 = arith.constant 0 : index
    %3 = vector.load %arg3[%c0_3, %c0_4] : memref<1x128xf32, #tpu.memory_space<vmem>>, vector<1x128xf32>
    %4 = vector.broadcast %3 : vector<1x128xf32> to vector<2x128xf32>
    %5 = arith.addf %2, %4 : vector<2x128xf32>
    %cst_5 = arith.constant 0.000000e+00 : f32
    %6 = vector.broadcast %cst_5 : f32 to vector<2x128xf32>
    %7 = arith.maximumf %5, %6 : vector<2x128xf32>
    %8 = arith.truncf %7 : vector<2x128xf32> to vector<2x128xbf16>
    %c0_6 = arith.constant 0 : index
    %c0_7 = arith.constant 0 : index
    %9 = vector.load %arg4[%c0_6, %c0_7] : memref<128x128xbf16, #tpu.memory_space<vmem>>, vector<128x128xbf16>
    %cst_8 = arith.constant dense<0.000000e+00> : vector<2x128xf32>
    %10 = tpu.matmul %8, %9, %cst_8 {dimension_numbers = #tpu.dot_dimension_numbers<[1], [0], [0], [1], [0, 0, 1, 1], [], []>} : vector<2x128xbf16>, vector<128x128xbf16>, vector<2x128xf32> -> vector<2x128xf32>
    %c0_9 = arith.constant 0 : index
    %c0_10 = arith.constant 0 : index
    %11 = vector.load %arg5[%c0_9, %c0_10] : memref<1x128xf32, #tpu.memory_space<vmem>>, vector<1x128xf32>
    %12 = vector.broadcast %11 : vector<1x128xf32> to vector<2x128xf32>
    %13 = arith.addf %10, %12 : vector<2x128xf32>
    %cst_11 = arith.constant dense<0xFF800000> : vector<2xf32>
    %14 = vector.multi_reduction <maximumf>, %13, %cst_11 [1] : vector<2x128xf32> to vector<2xf32>
    %15 = vector.shape_cast %14 : vector<2xf32> to vector<2x1xf32>
    %16 = vector.broadcast %15 : vector<2x1xf32> to vector<2x128xf32>
    %17 = arith.subf %13, %16 : vector<2x128xf32>
    %18 = math.exp %17 : vector<2x128xf32>
    %cst_12 = arith.constant dense<0.000000e+00> : vector<2xf32>
    %19 = vector.multi_reduction <add>, %18, %cst_12 [1] : vector<2x128xf32> to vector<2xf32>
    %20 = vector.shape_cast %19 : vector<2xf32> to vector<2x1xf32>
    %21 = tpu.reciprocal %20 {approx = true} : vector<2x1xf32> -> vector<2x1xf32>
    %22 = vector.broadcast %21 : vector<2x1xf32> to vector<2x128xf32>
    %23 = arith.mulf %18, %22 : vector<2x128xf32>
    %c0_13 = arith.constant 0 : index
    %c0_14 = arith.constant 0 : index
    %24 = vector.load %arg6[%c0_13, %c0_14] : memref<2x128xf32, #tpu.memory_space<vmem>>, vector<2x128xf32>
    tpu.vector_store %arg6[%c0_13, %c0_14], %23 {strides = array<i32>} : memref<2x128xf32, #tpu.memory_space<vmem>>, vector<2x128xf32>,
    return
  }
  func.func @transform_0(%arg0: i32) -> (i32, i32) {
    %c0_i32 = arith.constant 0 : i32
    %c0_i32_0 = arith.constant 0 : i32
    return %arg0, %c0_i32 : i32, i32
  }
  func.func @transform_1(%arg0: i32) -> (i32, i32) {
    %c0_i32 = arith.constant 0 : i32
    %c0_i32_0 = arith.constant 0 : i32
    %c0_i32_1 = arith.constant 0 : i32
    return %c0_i32, %c0_i32_0 : i32, i32
  }
  func.func @transform_2(%arg0: i32) -> (i32, i32) {
    %c0_i32 = arith.constant 0 : i32
    %c0_i32_0 = arith.constant 0 : i32
    %c0_i32_1 = arith.constant 0 : i32
    return %c0_i32, %c0_i32_0 : i32, i32
  }
  func.func @transform_3(%arg0: i32) -> (i32, i32) {
    %c0_i32 = arith.constant 0 : i32
    %c0_i32_0 = arith.constant 0 : i32
    %c0_i32_1 = arith.constant 0 : i32
    return %c0_i32, %c0_i32_0 : i32, i32
  }
  func.func @transform_4(%arg0: i32) -> (i32, i32) {
    %c0_i32 = arith.constant 0 : i32
    %c0_i32_0 = arith.constant 0 : i32
    %c0_i32_1 = arith.constant 0 : i32
    return %c0_i32, %c0_i32_0 : i32, i32
  }
  func.func @transform_5(%arg0: i32) -> (i32, i32) {
    %c0_i32 = arith.constant 0 : i32
    %c0_i32_0 = arith.constant 0 : i32
    return %arg0, %c0_i32 : i32, i32
  }
}

</mosaic_0001>

<bundles_post_ra>
// kernel: cnn_forward.3
= control target key start
LH: loop header
LB: loop body
LE: loop exit
PB: predicated region body
PF: predicated region fallthrough
CT: control target
= control target key end

     0   :  { %vm535_vm0 = vcmask 261120   ;;  %s2983_s1 = inlined_call_operand.vmem [shape: bf16[32,128], index: 1, kind: input, shape index: {}]   ;;  %s2984_s0 = inlined_call_operand.vmem [shape: bf16[4,288,32], index: 0, kind: input, shape index: {}]   ;;  %s2985_s2 = inlined_call_operand.vmem [shape: f32[1,128], index: 2, kind: input, shape index: {}]   ;;  %s2986_s3 = inlined_call_operand.vmem [shape: bf16[288,128], index: 3, kind: output, shape index: {}]  }
   0x1   :  { %v2284_v0 = vld [vmem:[%s2983_s1 + $0x8] sm:$0xff]   ;;  %v2285_v1 = vld [vmem:[%s2983_s1] sm:$0xff]   ;;  %v2290_v6 = vld [vmem:[%s2984_s0 + $0x10] sm:$0xff]  }
   0x2   :  { %2132 = vmatprep.subr.bf16.mxu0 %v2284_v0  ;;  %2280 = vmatprep.subr.bf16.mxu1 %v2284_v0  ;;  %v2286_v2 = vld [vmem:[%s2984_s0] sm:$0xff]   ;;  %v2288_v4 = vld [vmem:[%s2984_s0 + $0x8] sm:$0xff]   ;;  %v2291_v7 = vld [vmem:[%s2984_s0 + $0x130] sm:$0xff]  }
   0x3   :  { %2133 = vmatpush3.bf16.msra.mxu0 %v2284_v0  ;;  %2282 = vmatpush3.bf16.msra.mxu1 %v2284_v0  ;;  %v2287_v3 = vld [vmem:[%s2984_s0 + $0x120] sm:$0xff]   ;;  %v2289_v5 = vld [vmem:[%s2984_s0 + $0x128] sm:$0xff]   ;;  %v2292_v8 = vld [vmem:[%s2984_s0 + $0x18] sm:$0xff]  }
   0x4   :  { %2134 = vmatprep.subr.bf16.mxu0 %v2285_v1  ;;  %2281 = vmatprep.subr.bf16.mxu1 %v2285_v1  ;;  %v2293_v9 = vld [vmem:[%s2984_s0 + $0x138] sm:$0xff]   ;;  %v2294_v10 = vld [vmem:[%s2984_s0 + $0x20] sm:$0xff]   ;;  %v2296_v12 = vld [vmem:[%s2984_s0 + $0x28] sm:$0xff]  }
   0x5   :  { %2136 = vmatprep.mubr.msk.bf16.mxu0 %vm535_vm0, %v2286_v2  ;;  %2208 = vmatprep.mubr.msk.bf16.mxu1 %vm535_vm0, %v2287_v3  ;;  %v2295_v11 = vld [vmem:[%s2984_s0 + $0x140] sm:$0xff]   ;;  %v2297_v13 = vld [vmem:[%s2984_s0 + $0x148] sm:$0xff]   ;;  %v2298_v14 = vld [vmem:[%s2984_s0 + $0x30] sm:$0xff]  }
   0x6   :  { %v2299_v15 = vld [vmem:[%s2984_s0 + $0x150] sm:$0xff]   ;;  %v2300_v16 = vld [vmem:[%s2984_s0 + $0x38] sm:$0xff]   ;;  %v2302_v18 = vld [vmem:[%s2984_s0 + $0x40] sm:$0xff]  }
   0x7   :  { %2135 = vmatpush3.bf16.msra.mxu0 %v2285_v1  ;;  %2283 = vmatpush3.bf16.msra.mxu1 %v2285_v1  ;;  %v2301_v17 = vld [vmem:[%s2984_s0 + $0x158] sm:$0xff]   ;;  %v2303_v19 = vld [vmem:[%s2984_s0 + $0x160] sm:$0xff]   ;;  %v2304_v20 = vld [vmem:[%s2984_s0 + $0x48] sm:$0xff]  }
   0x8   :  { %v2305_v21 = vld [vmem:[%s2984_s0 + $0x168] sm:$0xff]   ;;  %v2306_v22 = vld [vmem:[%s2984_s0 + $0x50] sm:$0xff]   ;;  %v2308_v24 = vld [vmem:[%s2984_s0 + $0x58] sm:$0xff]  }
   0x9   :  { %v2307_v23 = vld [vmem:[%s2984_s0 + $0x170] sm:$0xff]   ;;  %v2309_v25 = vld [vmem:[%s2984_s0 + $0x178] sm:$0xff]   ;;  %v2310_v26 = vld [vmem:[%s2984_s0 + $0x60] sm:$0xff]  }
   0xa   :  { %2137 = vmatmul.mubr.msk.bf16.vlgmr.msra.gmra.mxu0 %vm535_vm0, %v2288_v4  ;;  %2209 = vmatmul.mubr.msk.bf16.vlgmr.msra.gmra.mxu1 %vm535_vm0, %v2289_v5  ;;  %v2311_v27 = vld [vmem:[%s2984_s0 + $0x180] sm:$0xff]   ;;  %v2312_v28 = vld [vmem:[%s2984_s0 + $0x68] sm:$0xff]   ;;  %v2314_v30 = vld [vmem:[%s2984_s0 + $0x70] sm:$0xff]  }
   0xb   :  { %2140 = vmatprep.mubr.msk.bf16.mxu0 %vm535_vm0, %v2290_v6  ;;  %2212 = vmatprep.mubr.msk.bf16.mxu1 %vm535_vm0, %v2291_v7  ;;  %v2313_v29 = vld [vmem:[%s2984_s0 + $0x188] sm:$0xff]   ;;  %v2315_v31 = vld [vmem:[%s2984_s0 + $0x190] sm:$0xff]   ;;  %v2316_v32 = vld [vmem:[%s2984_s0 + $0x78] sm:$0xff]  }
   0xc   :  { %v2317_v33 = vld [vmem:[%s2984_s0 + $0x198] sm:$0xff]   ;;  %v2318_v34 = vld [vmem:[%s2984_s0 + $0x80] sm:$0xff]   ;;  %v2320_v36 = vld [vmem:[%s2984_s0 + $0x88] sm:$0xff]  }
   0xd   :  { %v2319_v35 = vld [vmem:[%s2984_s0 + $0x1a0] sm:$0xff]   ;;  %v2321_v37 = vld [vmem:[%s2984_s0 + $0x1a8] sm:$0xff]   ;;  %v2322_v38 = vld [vmem:[%s2984_s0 + $0x90] sm:$0xff]  }
   0xe   :  { %v2323_v39 = vld [vmem:[%s2984_s0 + $0x1b0] sm:$0xff]   ;;  %v2324_v40 = vld [vmem:[%s2984_s0 + $0x98] sm:$0xff]   ;;  %v2326_v42 = vld [vmem:[%s2984_s0 + $0xa0] sm:$0xff]  }
   0xf   :  { %v2325_v41 = vld [vmem:[%s2984_s0 + $0x1b8] sm:$0xff]   ;;  %v2327_v43 = vld [vmem:[%s2984_s0 + $0x1c0] sm:$0xff]   ;;  %v2328_v44 = vld [vmem:[%s2984_s0 + $0xa8] sm:$0xff]  }
  0x10   :  { %v2329_v45 = vld [vmem:[%s2984_s0 + $0x1c8] sm:$0xff]   ;;  %v2330_v46 = vld [vmem:[%s2984_s0 + $0xb0] sm:$0xff]   ;;  %v2332_v48 = vld [vmem:[%s2984_s0 + $0xb8] sm:$0xff]  }
  0x11   :  { %v2331_v47 = vld [vmem:[%s2984_s0 + $0x1d0] sm:$0xff]   ;;  %v2333_v49 = vld [vmem:[%s2984_s0 + $0x1d8] sm:$0xff]   ;;  %v2334_v50 = vld [vmem:[%s2984_s0 + $0xc0] sm:$0xff]  }
  0x12   :  { %2141 = vmatmul.mubr.msk.bf16.gmra.mxu0 %vm535_vm0, %v2292_v8  ;;  %2213 = vmatmul.mubr.msk.bf16.gmra.mxu1 %vm535_vm0, %v2293_v9  ;;  %v2335_v51 = vld [vmem:[%s2984_s0 + $0x1e0] sm:$0xff]   ;;  %v2336_v52 = vld [vmem:[%s2984_s0 + $0xc8] sm:$0xff]   ;;  %v2338_v54 = vld [vmem:[%s2984_s0 + $0xd0] sm:$0xff]  }
  0x13   :  { %2144 = vmatprep.mubr.msk.bf16.mxu0 %vm535_vm0, %v2294_v10  ;;  %2216 = vmatprep.mubr.msk.bf16.mxu1 %vm535_vm0, %v2295_v11  ;;  %v2337_v53 = vld [vmem:[%s2984_s0 + $0x1e8] sm:$0xff]   ;;  %v2339_v55 = vld [vmem:[%s2984_s0 + $0x1f0] sm:$0xff]   ;;  %v2340_v56 = vld [vmem:[%s2984_s0 + $0xd8] sm:$0xff]  }
  0x14   :  { %v2341_v57 = vld [vmem:[%s2984_s0 + $0x1f8] sm:$0xff]   ;;  %v2342_v58 = vld [vmem:[%s2984_s0 + $0xe0] sm:$0xff]   ;;  %v2344_v60 = vld [vmem:[%s2984_s0 + $0xe8] sm:$0xff]  }
  0x15   :  { %v2343_v59 = vld [vmem:[%s2984_s0 + $0x200] sm:$0xff]   ;;  %v2345_v61 = vld [vmem:[%s2984_s0 + $0x208] sm:$0xff]   ;;  %v2346_v62 = vld [vmem:[%s2984_s0 + $0xf0] sm:$0xff]  }
  0x16   :  { %v2347_v63 = vld [vmem:[%s2984_s0 + $0x210] sm:$0xff]   ;;  %v2348_v0 = vld [vmem:[%s2984_s0 + $0xf8] sm:$0xff]   ;;  %v2350_v2 = vld [vmem:[%s2984_s0 + $0x100] sm:$0xff]  }
  0x17   :  { %v2349_v1 = vld [vmem:[%s2984_s0 + $0x218] sm:$0xff]   ;;  %v2351_v3 = vld [vmem:[%s2984_s0 + $0x220] sm:$0xff]   ;;  %v2352_v4 = vld [vmem:[%s2984_s0 + $0x108] sm:$0xff]  }
  0x18   :  { %v2353_v5 = vld [vmem:[%s2984_s0 + $0x228] sm:$0xff]   ;;  %v2354_v6 = vld [vmem:[%s2984_s0 + $0x110] sm:$0xff]   ;;  %v2356_v8 = vld [vmem:[%s2984_s0 + $0x118] sm:$0xff]  }
  0x19   :  { %v2355_v7 = vld [vmem:[%s2984_s0 + $0x230] sm:$0xff]   ;;  %v2357_v9 = vld [vmem:[%s2984_s0 + $0x238] sm:$0xff]  }
  0x1a   :  { %2145 = vmatmul.mubr.msk.bf16.gmra.mxu0 %vm535_vm0, %v2296_v12  ;;  %2217 = vmatmul.mubr.msk.bf16.gmra.mxu1 %vm535_vm0, %v2297_v13 }
  0x1b   :  { %2148 = vmatprep.mubr.msk.bf16.mxu0 %vm535_vm0, %v2298_v14  ;;  %2220 = vmatprep.mubr.msk.bf16.mxu1 %vm535_vm0, %v2299_v15 }
  0x22   :  { %2149 = vmatmul.mubr.msk.bf16.gmra.mxu0 %vm535_vm0, %v2300_v16  ;;  %2221 = vmatmul.mubr.msk.bf16.gmra.mxu1 %vm535_vm0, %v2301_v17 }
  0x23   :  { %2152 = vmatprep.mubr.msk.bf16.mxu0 %vm535_vm0, %v2302_v18  ;;  %2224 = vmatprep.mubr.msk.bf16.mxu1 %vm535_vm0, %v2303_v19 }
  0x2a   :  { %2153 = vmatmul.mubr.msk.bf16.gmra.mxu0 %vm535_vm0, %v2304_v20  ;;  %2225 = vmatmul.mubr.msk.bf16.gmra.mxu1 %vm535_vm0, %v2305_v21 }
  0x2b   :  { %2156 = vmatprep.mubr.msk.bf16.mxu0 %vm535_vm0, %v2306_v22  ;;  %2228 = vmatprep.mubr.msk.bf16.mxu1 %vm535_vm0, %v2307_v23 }
  0x32   :  { %2157 = vmatmul.mubr.msk.bf16.gmra.mxu0 %vm535_vm0, %v2308_v24  ;;  %2229 = vmatmul.mubr.msk.bf16.gmra.mxu1 %vm535_vm0, %v2309_v25 }
  0x33   :  { %2160 = vmatprep.mubr.msk.bf16.mxu0 %vm535_vm0, %v2310_v26  ;;  %2232 = vmatprep.mubr.msk.bf16.mxu1 %vm535_vm0, %v2311_v27 }
  0x3a   :  { %2161 = vmatmul.mubr.msk.bf16.gmra.mxu0 %vm535_vm0, %v2312_v28  ;;  %2233 = vmatmul.mubr.msk.bf16.gmra.mxu1 %vm535_vm0, %v2313_v29 }
  0x3b   :  { %2164 = vmatprep.mubr.msk.bf16.mxu0 %vm535_vm0, %v2314_v30  ;;  %2236 = vmatprep.mubr.msk.bf16.mxu1 %vm535_vm0, %v2315_v31 }
  0x42   :  { %2165 = vmatmul.mubr.msk.bf16.gmra.mxu0 %vm535_vm0, %v2316_v32  ;;  %2237 = vmatmul.mubr.msk.bf16.gmra.mxu1 %vm535_vm0, %v2317_v33 }
  0x43   :  { %2168 = vmatprep.mubr.msk.bf16.mxu0 %vm535_vm0, %v2318_v34  ;;  %2240 = vmatprep.mubr.msk.bf16.mxu1 %vm535_vm0, %v2319_v35 }
  0x4a   :  { %2169 = vmatmul.mubr.msk.bf16.gmra.mxu0 %vm535_vm0, %v2320_v36  ;;  %2241 = vmatmul.mubr.msk.bf16.gmra.mxu1 %vm535_vm0, %v2321_v37 }
  0x4b   :  { %2172 = vmatprep.mubr.msk.bf16.mxu0 %vm535_vm0, %v2322_v38  ;;  %2244 = vmatprep.mubr.msk.bf16.mxu1 %vm535_vm0, %v2323_v39 }
  0x52   :  { %2173 = vmatmul.mubr.msk.bf16.gmra.mxu0 %vm535_vm0, %v2324_v40  ;;  %2245 = vmatmul.mubr.msk.bf16.gmra.mxu1 %vm535_vm0, %v2325_v41 }
  0x53   :  { %2176 = vmatprep.mubr.msk.bf16.mxu0 %vm535_vm0, %v2326_v42  ;;  %2248 = vmatprep.mubr.msk.bf16.mxu1 %vm535_vm0, %v2327_v43 }
  0x5a   :  { %2177 = vmatmul.mubr.msk.bf16.gmra.mxu0 %vm535_vm0, %v2328_v44  ;;  %2249 = vmatmul.mubr.msk.bf16.gmra.mxu1 %vm535_vm0, %v2329_v45 }
  0x5b   :  { %2180 = vmatprep.mubr.msk.bf16.mxu0 %vm535_vm0, %v2330_v46  ;;  %2252 = vmatprep.mubr.msk.bf16.mxu1 %vm535_vm0, %v2331_v47 }
  0x62   :  { %2181 = vmatmul.mubr.msk.bf16.gmra.mxu0 %vm535_vm0, %v2332_v48  ;;  %2253 = vmatmul.mubr.msk.bf16.gmra.mxu1 %vm535_vm0, %v2333_v49 }
  0x63   :  { %2184 = vmatprep.mubr.msk.bf16.mxu0 %vm535_vm0, %v2334_v50  ;;  %2256 = vmatprep.mubr.msk.bf16.mxu1 %vm535_vm0, %v2335_v51 }
  0x6a   :  { %2185 = vmatmul.mubr.msk.bf16.gmra.mxu0 %vm535_vm0, %v2336_v52  ;;  %2257 = vmatmul.mubr.msk.bf16.gmra.mxu1 %vm535_vm0, %v2337_v53 }
  0x6b   :  { %2188 = vmatprep.mubr.msk.bf16.mxu0 %vm535_vm0, %v2338_v54  ;;  %2260 = vmatprep.mubr.msk.bf16.mxu1 %vm535_vm0, %v2339_v55 }
  0x72   :  { %2189 = vmatmul.mubr.msk.bf16.gmra.mxu0 %vm535_vm0, %v2340_v56  ;;  %2261 = vmatmul.mubr.msk.bf16.gmra.mxu1 %vm535_vm0, %v2341_v57 }
  0x73   :  { %2192 = vmatprep.mubr.msk.bf16.mxu0 %vm535_vm0, %v2342_v58  ;;  %2264 = vmatprep.mubr.msk.bf16.mxu1 %vm535_vm0, %v2343_v59 }
  0x7a   :  { %2193 = vmatmul.mubr.msk.bf16.gmra.mxu0 %vm535_vm0, %v2344_v60  ;;  %2265 = vmatmul.mubr.msk.bf16.gmra.mxu1 %vm535_vm0, %v2345_v61 }
  0x7b   :  { %2196 = vmatprep.mubr.msk.bf16.mxu0 %vm535_vm0, %v2346_v62  ;;  %2268 = vmatprep.mubr.msk.bf16.mxu1 %vm535_vm0, %v2347_v63 }
  0x82   :  { %2197 = vmatmul.mubr.msk.bf16.gmra.mxu0 %vm535_vm0, %v2348_v0  ;;  %2269 = vmatmul.mubr.msk.bf16.gmra.mxu1 %vm535_vm0, %v2349_v1 }
  0x83   :  { %2200 = vmatprep.mubr.msk.bf16.mxu0 %vm535_vm0, %v2350_v2  ;;  %2272 = vmatprep.mubr.msk.bf16.mxu1 %vm535_vm0, %v2351_v3 }
  0x8a   :  { %2201 = vmatmul.mubr.msk.bf16.gmra.mxu0 %vm535_vm0, %v2352_v4  ;;  %2273 = vmatmul.mubr.msk.bf16.gmra.mxu1 %vm535_vm0, %v2353_v5 }
  0x8b   :  { %2204 = vmatprep.mubr.msk.bf16.mxu0 %vm535_vm0, %v2354_v6  ;;  %2276 = vmatprep.mubr.msk.bf16.mxu1 %vm535_vm0, %v2355_v7 }
  0x92   :  { %2205 = vmatmul.mubr.msk.bf16.gmra.mxu0 %vm535_vm0, %v2356_v8  ;;  %2277 = vmatmul.mubr.msk.bf16.gmra.mxu1 %vm535_vm0, %v2357_v9 }
  0xca   :  { %v2672_v10 = vpop.f32.mrf.mxu0  ;;  %v2674_v11 = vpop.f32.mrf.mxu1 }
  0xcc   :  { %v2676_v12 = vpop.f32.mrf.mxu0  ;;  %v2678_v13 = vpop.f32.mrf.mxu1 }
  0xce   :  { %v2680_v14 = vpop.f32.mrf.mxu0  ;;  %v2682_v15 = vpop.f32.mrf.mxu1 }
  0xd0   :  { %v2684_v16 = vpop.f32.mrf.mxu0  ;;  %v2686_v17 = vpop.f32.mrf.mxu1 }
  0xd2   :  { %v2688_v18 = vpop.f32.mrf.mxu0  ;;  %v2690_v19 = vpop.f32.mrf.mxu1 }
  0xd4   :  { %v2692_v20 = vpop.f32.mrf.mxu0  ;;  %v2694_v21 = vpop.f32.mrf.mxu1 }
  0xd6   :  { %v2696_v22 = vpop.f32.mrf.mxu0  ;;  %v2698_v23 = vpop.f32.mrf.mxu1 }
  0xd8   :  { %v2700_v24 = vpop.f32.mrf.mxu0  ;;  %v2702_v25 = vpop.f32.mrf.mxu1 }
  0xda   :  { %v2704_v26 = vpop.f32.mrf.mxu0  ;;  %v2706_v27 = vpop.f32.mrf.mxu1 }
  0xdc   :  { %v2708_v28 = vpop.f32.mrf.mxu0  ;;  %v2710_v29 = vpop.f32.mrf.mxu1 }
  0xde   :  { %v2712_v30 = vpop.f32.mrf.mxu0  ;;  %v2714_v31 = vpop.f32.mrf.mxu1 }
  0xe0   :  { %v2716_v32 = vpop.f32.mrf.mxu0  ;;  %v2718_v33 = vpop.f32.mrf.mxu1 }
  0xe2   :  { %v2720_v34 = vpop.f32.mrf.mxu0  ;;  %v2722_v35 = vpop.f32.mrf.mxu1 }
  0xe4   :  { %v2724_v36 = vpop.f32.mrf.mxu0  ;;  %v2726_v37 = vpop.f32.mrf.mxu1 }
  0xe6   :  { %v2728_v38 = vpop.f32.mrf.mxu0  ;;  %v2730_v39 = vpop.f32.mrf.mxu1 }
  0xe8   :  { %v2732_v40 = vpop.f32.mrf.mxu0  ;;  %v2734_v41 = vpop.f32.mrf.mxu1 }
  0xea   :  { %v2736_v42 = vpop.f32.mrf.mxu0  ;;  %v2738_v43 = vpop.f32.mrf.mxu1 }
  0xec   :  { %v2740_v44 = vpop.f32.mrf.mxu0  ;;  %v2742_v45 = vpop.f32.mrf.mxu1 }
  0xee   :  { %v2744_v46 = vpop.f32.mrf.mxu0  ;;  %v2746_v47 = vpop.f32.mrf.mxu1 }
  0xf0   :  { %v2748_v48 = vpop.f32.mrf.mxu0  ;;  %v2750_v49 = vpop.f32.mrf.mxu1 }
  0xf2   :  { %v2752_v50 = vpop.f32.mrf.mxu0  ;;  %v2754_v51 = vpop.f32.mrf.mxu1 }
  0xf4   :  { %v2756_v52 = vpop.f32.mrf.mxu0  ;;  %v2758_v53 = vpop.f32.mrf.mxu1 }
  0xf6   :  { %v2760_v54 = vpop.f32.mrf.mxu0  ;;  %v2762_v55 = vpop.f32.mrf.mxu1 }
  0xf8   :  { %v2764_v56 = vpop.f32.mrf.mxu0  ;;  %v2766_v57 = vpop.f32.mrf.mxu1 }
  0xf9   :  { %2987 = vst [vmem:[#allocation2_spill] sm:$0xff] %v2766_v57 }
  0xfa   :  { %v2768_v58 = vpop.f32.mrf.mxu0  ;;  %v2770_v59 = vpop.f32.mrf.mxu1 }
  0xfb   :  { %2988 = vst [vmem:[#allocation3_spill] sm:$0xff] %v2768_v58  ;;  %2989 = vst [vmem:[#allocation4_spill] sm:$0xff] %v2770_v59 }
  0xfc   :  { %v2772_v60 = vpop.f32.mrf.mxu0  ;;  %v2774_v61 = vpop.f32.mrf.mxu1 }
  0xfd   :  { %2990 = vst [vmem:[#allocation5_spill] sm:$0xff] %v2772_v60  ;;  %2991 = vst [vmem:[#allocation6_spill] sm:$0xff] %v2774_v61 }
  0xfe   :  { %v2776_v62 = vpop.f32.mrf.mxu0  ;;  %v2778_v63 = vpop.f32.mrf.mxu1 }
  0xff   :  { %2992 = vst [vmem:[#allocation7_spill] sm:$0xff] %v2776_v62  ;;  %2993 = vst [vmem:[#allocation8_spill] sm:$0xff] %v2778_v63 }
 0x100   :  { %v2780_v0 = vpop.f32.mrf.mxu0  ;;  %v2782_v1 = vpop.f32.mrf.mxu1 }
 0x101   :  { %2994 = vst [vmem:[#allocation9_spill] sm:$0xff] %v2780_v0  ;;  %2995 = vst [vmem:[#allocation10_spill] sm:$0xff] %v2782_v1 }
 0x102   :  { %v2784_v2 = vpop.f32.mrf.mxu0  ;;  %v2786_v3 = vpop.f32.mrf.mxu1 }
 0x103   :  { %2996 = vst [vmem:[#allocation11_spill] sm:$0xff] %v2784_v2  ;;  %2997 = vst [vmem:[#allocation12_spill] sm:$0xff] %v2786_v3 }
 0x104   :  { %v2788_v4 = vpop.f32.mrf.mxu0  ;;  %v2790_v5 = vpop.f32.mrf.mxu1 }
 0x105   :  { %2998 = vst [vmem:[#allocation13_spill] sm:$0xff] %v2788_v4  ;;  %2999 = vst [vmem:[#allocation14_spill] sm:$0xff] %v2790_v5 }
 0x106   :  { %v2792_v6 = vpop.f32.mrf.mxu0  ;;  %v2794_v7 = vpop.f32.mrf.mxu1 }
 0x107   :  { %3000 = vst [vmem:[#allocation15_spill] sm:$0xff] %v2792_v6  ;;  %3001 = vst [vmem:[#allocation16_spill] sm:$0xff] %v2794_v7 }
 0x108   :  { %v2796_v8 = vpop.f32.mrf.mxu0  ;;  %v2798_v9 = vpop.f32.mrf.mxu1 }
 0x109   :  { %3002 = vst [vmem:[#allocation17_spill] sm:$0xff] %v2796_v8  ;;  %3003 = vst [vmem:[#allocation18_spill] sm:$0xff] %v2798_v9 }
 0x10a   :  { %v2800_v63 = vpop.f32.mrf.mxu0  ;;  %v2802_v0 = vpop.f32.mrf.mxu1 }
 0x10b   :  { %3004 = vst [vmem:[#allocation19_spill] sm:$0xff] %v2800_v63  ;;  %3005 = vst [vmem:[#allocation20_spill] sm:$0xff] %v2802_v0 }
 0x10c   :  { %v2804_v1 = vpop.f32.mrf.mxu0  ;;  %v2806_v2 = vpop.f32.mrf.mxu1 }
 0x10d   :  { %3006 = vst [vmem:[#allocation21_spill] sm:$0xff] %v2804_v1  ;;  %3007 = vst [vmem:[#allocation22_spill] sm:$0xff] %v2806_v2 }
 0x10e   :  { %v2808_v3 = vpop.f32.mrf.mxu0  ;;  %v2810_v4 = vpop.f32.mrf.mxu1 }
 0x10f   :  { %3008 = vst [vmem:[#allocation23_spill] sm:$0xff] %v2808_v3  ;;  %3009 = vst [vmem:[#allocation24_spill] sm:$0xff] %v2810_v4  ;;  %v2822_v4 = vld [vmem:[%s2985_s2] ss:$0 sm:$0xff] }
 0x110   :  { %v2812_v5 = vpop.f32.mrf.mxu0  ;;  %v2814_v6 = vpop.f32.mrf.mxu1 }
 0x111   :  { %3010 = vst [vmem:[#allocation25_spill] sm:$0xff] %v2812_v5  ;;  %3011 = vst [vmem:[#allocation26_spill] sm:$0xff] %v2814_v6 }
 0x112   :  { %v2174_v7 = vpop.f32.mrf.mxu0  ;;  %v2246_v8 = vpop.f32.mrf.mxu1 }
 0x113   :  { %v1367_v9 = vmax.f32 %v2672_v10, %v2174_v7 }
 0x114   :  { %v930_v62 = vpop.f32.mrf.mxu0  ;;  %v1218_v63 = vpop.f32.mrf.mxu1 }
 0x115   :  { %v1368_v0 = vmax.f32 %v1367_v9, %v2674_v11  ;;  %v1361_v1 = vmax.f32 %v2676_v12, %v930_v62 }
 0x116   :  { %v2175_v61 = vpop.f32.mrf.mxu0  ;;  %v2247_v2 = vpop.f32.mrf.mxu1 }
 0x117   :  { %v1369_v60 = vmax.f32 %v1368_v0, %v2246_v8  ;;  %v1362_v6 = vmax.f32 %v1361_v1, %v2678_v13  ;;  %v1370_v5 = vmax.f32 %v2680_v14, %v2175_v61 }
 0x118   :  { %v933_v3 = vpop.f32.mrf.mxu0  ;;  %v1221_v10 = vpop.f32.mrf.mxu1 }
 0x119   :  { %v1363_v7 = vmax.f32 %v1362_v6, %v1218_v63  ;;  %v1371_v59 = vmax.f32 %v1370_v5, %v2682_v15  ;;  %v1364_v11 = vmax.f32 %v2684_v16, %v933_v3  ;;  %v1478_v12 = vadd.f32 %v2822_v4, %v1369_v60 }
 0x11a   :  { %v2178_v62 = vpop.f32.mrf.mxu0  ;;  %v2250_v0 = vpop.f32.mrf.mxu1 }
 0x11b   :  { %v1372_v8 = vmax.f32 %v1371_v59, %v2247_v2  ;;  %v1365_v9 = vmax.f32 %v1364_v11, %v2686_v17  ;;  %v1379_v57 = vmax.f32 %v2688_v18, %v2178_v62  ;;  %v1476_v14 = vadd.f32 %v2822_v4, %v1363_v7 }
 0x11c   :  { %v946_v58 = vpop.f32.mrf.mxu0  ;;  %v1234_v13 = vpop.f32.mrf.mxu1  ;;  %v1514_v1 = vmax.f32 %v1478_v12, 0.0 }
 0x11d   :  { %v1479_v61 = vadd.f32 %v2822_v4, %v1372_v8  ;;  %v1366_v63 = vmax.f32 %v1365_v9, %v1221_v10  ;;  %v1373_v15 = vmax.f32 %v2692_v20, %v946_v58  ;;  %v1380_v16 = vmax.f32 %v1379_v57, %v2690_v19 }
 0x11e   :  { %v2179_v60 = vpop.f32.mrf.mxu0  ;;  %v2251_v3 = vpop.f32.mrf.mxu1  ;;  %v1512_v11 = vmax.f32 %v1476_v14, 0.0 }
 0x11f   :  { %v1515_v5 = vmax.f32 %v1479_v61, 0.0  ;;  %v1477_v59 = vadd.f32 %v2822_v4, %v1366_v63  ;;  %v1374_v17 = vmax.f32 %v1373_v15, %v2694_v21  ;;  %v1382_v18 = vmax.f32 %v2696_v22, %v2179_v60 }
 0x120   :  { %v1381_v2 = vmax.f32 %v1380_v16, %v2250_v0  ;;  %v949_v6 = vpop.f32.mrf.mxu0  ;;  %v1237_v7 = vpop.f32.mrf.mxu1 }
 0x121   :  { %v1959_v62 = vpack.c.bf16 %v1515_v5, %v1514_v1  ;;  %v1513_v10 = vmax.f32 %v1477_v59, 0.0  ;;  %v1383_v20 = vmax.f32 %v1382_v18, %v2698_v23  ;;  %v1375_v19 = vmax.f32 %v1374_v17, %v1234_v13 }
 0x122   :  { %v1482_v58 = vadd.f32 %v2822_v4, %v1381_v2  ;;  %v1376_v57 = vmax.f32 %v2700_v24, %v949_v6  ;;  %v2182_v12 = vpop.f32.mrf.mxu0  ;;  %v2254_v8 = vpop.f32.mrf.mxu1 }
 0x123   :  { %2041 = vst [vmem:[%s2986_s3 + $0x8] sm:$0xff] %v1959_v62   ;;  %v1954_v21 = vpack.c.bf16 %v1513_v10, %v1512_v11  ;;  %v1384_v22 = vmax.f32 %v1383_v20, %v2251_v3  ;;  %v1391_v0 = vmax.f32 %v2704_v26, %v2182_v12  ;;  %v1480_v15 = vadd.f32 %v2822_v4, %v1375_v19 }
 0x124   :  { %v1377_v9 = vmax.f32 %v1376_v57, %v2702_v25  ;;  %v962_v14 = vpop.f32.mrf.mxu0  ;;  %v1250_v61 = vpop.f32.mrf.mxu1  ;;  %v1518_v63 = vmax.f32 %v1482_v58, 0.0 }
 0x125   :  { %1955 = vst [vmem:[%s2986_s3] sm:$0xff] %v1954_v21   ;;  %v1483_v23 = vadd.f32 %v2822_v4, %v1384_v22  ;;  %v1392_v24 = vmax.f32 %v1391_v0, %v2706_v27  ;;  %v1385_v13 = vmax.f32 %v2708_v28, %v962_v14  ;;  %v1516_v6 = vmax.f32 %v1480_v15, 0.0 }
 0x126   :  { %v1378_v1 = vmax.f32 %v1377_v9, %v1237_v7  ;;  %v2183_v16 = vpop.f32.mrf.mxu0  ;;  %v2255_v26 = vpop.f32.mrf.mxu1 }
 0x127   :  { %v1519_v60 = vmax.f32 %v1483_v23, 0.0  ;;  %v1393_v25 = vmax.f32 %v1392_v24, %v2254_v8  ;;  %v1386_v3 = vmax.f32 %v1385_v13, %v2710_v29  ;;  %v1394_v5 = vmax.f32 %v2712_v30, %v2183_v16 }
 0x128   :  { %v1481_v59 = vadd.f32 %v2822_v4, %v1378_v1  ;;  %v965_v17 = vpop.f32.mrf.mxu0  ;;  %v1253_v18 = vpop.f32.mrf.mxu1 }
 0x129   :  { %v1969_v2 = vpack.c.bf16 %v1519_v60, %v1518_v63  ;;  %v1387_v27 = vmax.f32 %v1386_v3, %v1250_v61  ;;  %v1395_v28 = vmax.f32 %v1394_v5, %v2714_v31  ;;  %v1486_v7 = vadd.f32 %v2822_v4, %v1393_v25 }
 0x12a   :  { %v1517_v11 = vmax.f32 %v1481_v59, 0.0  ;;  %v1388_v62 = vmax.f32 %v2716_v32, %v965_v17  ;;  %v2186_v10 = vpop.f32.mrf.mxu0  ;;  %v2258_v20 = vpop.f32.mrf.mxu1 }
 0x12b   :  { %2043 = vst [vmem:[%s2986_s3 + $0x18] sm:$0xff] %v1969_v2   ;;  %v1396_v29 = vmax.f32 %v1395_v28, %v2255_v26  ;;  %v1403_v30 = vmax.f32 %v2720_v34, %v2186_v10  ;;  %v1484_v12 = vadd.f32 %v2822_v4, %v1387_v27  ;;  %v1522_v22 = vmax.f32 %v1486_v7, 0.0 }
 0x12c   :  { %v1964_v58 = vpack.c.bf16 %v1517_v11, %v1516_v6  ;;  %v1389_v19 = vmax.f32 %v1388_v62, %v2718_v33  ;;  %v978_v57 = vpop.f32.mrf.mxu0  ;;  %v1266_v31 = vpop.f32.mrf.mxu1 }
 0x12d   :  { %v1487_v8 = vadd.f32 %v2822_v4, %v1396_v29  ;;  %v1404_v32 = vmax.f32 %v1403_v30, %v2722_v35  ;;  %v1397_v21 = vmax.f32 %v2724_v36, %v978_v57  ;;  %v1520_v63 = vmax.f32 %v1484_v12, 0.0 }
 0x12e   :  { %2042 = vst [vmem:[%s2986_s3 + $0x10] sm:$0xff] %v1964_v58   ;;  %v1390_v0 = vmax.f32 %v1389_v19, %v1253_v18  ;;  %v2187_v34 = vpop.f32.mrf.mxu0  ;;  %v2259_v9 = vpop.f32.mrf.mxu1 }
 0x12f   :  { %v1523_v14 = vmax.f32 %v1487_v8, 0.0  ;;  %v1405_v33 = vmax.f32 %v1404_v32, %v2258_v20  ;;  %v1398_v61 = vmax.f32 %v1397_v21, %v2726_v37  ;;  %v1406_v23 = vmax.f32 %v2728_v38, %v2187_v34 }
 0x130   :  { %v1485_v24 = vadd.f32 %v2822_v4, %v1390_v0  ;;  %v981_v13 = vpop.f32.mrf.mxu0  ;;  %v1269_v35 = vpop.f32.mrf.mxu1 }
 0x131   :  { %v1979_v36 = vpack.c.bf16 %v1523_v14, %v1522_v22  ;;  %v1407_v15 = vmax.f32 %v1406_v23, %v2730_v39  ;;  %v1490_v16 = vadd.f32 %v2822_v4, %v1405_v33  ;;  %v1399_v26 = vmax.f32 %v1398_v61, %v1266_v31 }
 0x132   :  { %v1521_v1 = vmax.f32 %v1485_v24, 0.0  ;;  %v1400_v60 = vmax.f32 %v2732_v40, %v981_v13  ;;  %v2190_v25 = vpop.f32.mrf.mxu0  ;;  %v2262_v3 = vpop.f32.mrf.mxu1 }
 0x133   :  { %2045 = vst [vmem:[%s2986_s3 + $0x28] sm:$0xff] %v1979_v36   ;;  %v1408_v37 = vmax.f32 %v1407_v15, %v2259_v9  ;;  %v1415_v38 = vmax.f32 %v2736_v42, %v2190_v25  ;;  %v1526_v27 = vmax.f32 %v1490_v16, 0.0  ;;  %v1488_v28 = vadd.f32 %v2822_v4, %v1399_v26 }
 0x134   :  { %v1974_v5 = vpack.c.bf16 %v1521_v1, %v1520_v63  ;;  %v1401_v59 = vmax.f32 %v1400_v60, %v2734_v41  ;;  %v994_v17 = vpop.f32.mrf.mxu0  ;;  %v1282_v39 = vpop.f32.mrf.mxu1 }
 0x135   :  { %v1491_v18 = vadd.f32 %v2822_v4, %v1408_v37  ;;  %v1416_v2 = vmax.f32 %v1415_v38, %v2738_v43  ;;  %v1409_v40 = vmax.f32 %v2740_v44, %v994_v17  ;;  %v1524_v19 = vmax.f32 %v1488_v28, 0.0 }
 0x136   :  { %2044 = vst [vmem:[%s2986_s3 + $0x20] sm:$0xff] %v1974_v5   ;;  %v1402_v6 = vmax.f32 %v1401_v59, %v1269_v35  ;;  %v2191_v42 = vpop.f32.mrf.mxu0  ;;  %v2263_v11 = vpop.f32.mrf.mxu1  ;;  %v3013_v59 = vld [vmem:[#allocation2_spill] sm:$0xff] }
 0x137   :  { %v1527_v7 = vmax.f32 %v1491_v18, 0.0  ;;  %v1417_v41 = vmax.f32 %v1416_v2, %v2262_v3  ;;  %v1410_v62 = vmax.f32 %v1409_v40, %v2742_v45  ;;  %v1418_v10 = vmax.f32 %v2744_v46, %v2191_v42  ;;  %v3014_v2 = vld [vmem:[#allocation4_spill] sm:$0xff] }
 0x138   :  { %v1489_v43 = vadd.f32 %v2822_v4, %v1402_v6  ;;  %v997_v20 = vpop.f32.mrf.mxu0  ;;  %v1285_v44 = vpop.f32.mrf.mxu1 }
 0x139   :  { %v1989_v29 = vpack.c.bf16 %v1527_v7, %v1526_v27  ;;  %v1411_v30 = vmax.f32 %v1410_v62, %v1282_v39  ;;  %v1419_v58 = vmax.f32 %v1418_v10, %v2746_v47  ;;  %v1494_v31 = vadd.f32 %v2822_v4, %v1417_v41  ;;  %v3015_v27 = vld [vmem:[#allocation5_spill] sm:$0xff]  ;;  %v3016_v10 = vld [vmem:[#allocation6_spill] sm:$0xff] }
 0x13a   :  { %v1525_v57 = vmax.f32 %v1489_v43, 0.0  ;;  %v1412_v12 = vmax.f32 %v2748_v48, %v997_v20  ;;  %v2194_v8 = vpop.f32.mrf.mxu0  ;;  %v2266_v32 = vpop.f32.mrf.mxu1  ;;  %v3017_v20 = vld [vmem:[#allocation7_spill] sm:$0xff] }
 0x13b   :  { %2047 = vst [vmem:[%s2986_s3 + $0x38] sm:$0xff] %v1989_v29   ;;  %v1420_v45 = vmax.f32 %v1419_v58, %v2263_v11  ;;  %v1427_v46 = vmax.f32 %v2752_v50, %v2194_v8  ;;  %v1492_v34 = vadd.f32 %v2822_v4, %v1411_v30  ;;  %v1530_v33 = vmax.f32 %v1494_v31, 0.0  ;;  %v3018_v31 = vld [vmem:[#allocation8_spill] sm:$0xff] }
 0x13c   :  { %v1984_v21 = vpack.c.bf16 %v1525_v57, %v1524_v19  ;;  %v1413_v22 = vmax.f32 %v1412_v12, %v2750_v49  ;;  %v1010_v0 = vpop.f32.mrf.mxu0  ;;  %v1298_v47 = vpop.f32.mrf.mxu1 }
 0x13d   :  { %v1495_v9 = vadd.f32 %v2822_v4, %v1420_v45  ;;  %v1428_v48 = vmax.f32 %v1427_v46, %v2754_v51  ;;  %v1421_v14 = vmax.f32 %v2756_v52, %v1010_v0  ;;  %v1528_v15 = vmax.f32 %v1492_v34, 0.0  ;;  %v3019_v46 = vld [vmem:[#allocation9_spill] sm:$0xff]  ;;  %v3020_v34 = vld [vmem:[#allocation11_spill] sm:$0xff] }
 0x13e   :  { %2046 = vst [vmem:[%s2986_s3 + $0x30] sm:$0xff] %v1984_v21   ;;  %v1414_v61 = vmax.f32 %v1413_v22, %v1285_v44  ;;  %v2195_v50 = vpop.f32.mrf.mxu0  ;;  %v2267_v23 = vpop.f32.mrf.mxu1 }
 0x13f   :  { %v1531_v24 = vmax.f32 %v1495_v9, 0.0  ;;  %v1429_v49 = vmax.f32 %v1428_v48, %v2266_v32  ;;  %v1422_v13 = vmax.f32 %v1421_v14, %v2758_v53  ;;  %v1430_v35 = vmax.f32 %v2760_v54, %v2195_v50  ;;  %v3012_v54 = vld [vmem:[#allocation3_spill] sm:$0xff]  ;;  %v3021_v14 = vld [vmem:[#allocation10_spill] sm:$0xff] }
 0x140   :  { %v1493_v63 = vadd.f32 %v2822_v4, %v1414_v61  ;;  %v1013_v36 = vpop.f32.mrf.mxu0  ;;  %v1301_v51 = vpop.f32.mrf.mxu1 }
 0x141   :  { %v1999_v52 = vpack.c.bf16 %v1531_v24, %v1530_v33  ;;  %v1431_v1 = vmax.f32 %v1430_v35, %v2762_v55  ;;  %v1498_v26 = vadd.f32 %v2822_v4, %v1429_v49  ;;  %v1423_v60 = vmax.f32 %v1422_v13, %v1298_v47  ;;  %v3022_v49 = vld [vmem:[#allocation12_spill] sm:$0xff]  ;;  %v3023_v35 = vld [vmem:[#allocation13_spill] sm:$0xff] }
 0x142   :  { %v1529_v16 = vmax.f32 %v1493_v63, 0.0  ;;  %v1424_v25 = vmax.f32 %v2764_v56, %v1013_v36  ;;  %v2198_v3 = vpop.f32.mrf.mxu0  ;;  %v2270_v37 = vpop.f32.mrf.mxu1 }
 0x143   :  { %2049 = vst [vmem:[%s2986_s3 + $0x48] sm:$0xff] %v1999_v52   ;;  %v1432_v53 = vmax.f32 %v1431_v1, %v2267_v23  ;;  %v1439_v38 = vmax.f32 %v3012_v54, %v2198_v3  ;;  %v1534_v28 = vmax.f32 %v1498_v26, 0.0  ;;  %v1496_v6 = vadd.f32 %v2822_v4, %v1423_v60  ;;  %v3024_v26 = vld [vmem:[#allocation14_spill] sm:$0xff] }
 0x144   :  { %v1994_v5 = vpack.c.bf16 %v1529_v16, %v1528_v15  ;;  %v1425_v17 = vmax.f32 %v1424_v25, %v3013_v59  ;;  %v1026_v39 = vpop.f32.mrf.mxu0  ;;  %v1314_v55 = vpop.f32.mrf.mxu1  ;;  %v3025_v25 = vld [vmem:[#allocation15_spill] sm:$0xff]  ;;  %v3026_v59 = vld [vmem:[#allocation16_spill] sm:$0xff] }
 0x145   :  { %v1499_v18 = vadd.f32 %v2822_v4, %v1432_v53  ;;  %v1440_v40 = vmax.f32 %v1439_v38, %v3014_v2  ;;  %v1433_v56 = vmax.f32 %v3015_v27, %v1026_v39  ;;  %v1532_v8 = vmax.f32 %v1496_v6, 0.0  ;;  %v3027_v2 = vld [vmem:[#allocation17_spill] sm:$0xff]  ;;  %v3028_v6 = vld [vmem:[#allocation19_spill] sm:$0xff] }
 0x146   :  { %2048 = vst [vmem:[%s2986_s3 + $0x40] sm:$0xff] %v1994_v5   ;;  %v1426_v42 = vmax.f32 %v1425_v17, %v1301_v51  ;;  %v2199_v11 = vpop.f32.mrf.mxu0  ;;  %v2271_v7 = vpop.f32.mrf.mxu1 }
 0x147   :  { %v1535_v41 = vmax.f32 %v1499_v18, 0.0  ;;  %v1441_v62 = vmax.f32 %v1440_v40, %v2270_v37  ;;  %v1434_v43 = vmax.f32 %v1433_v56, %v3016_v10  ;;  %v1442_v44 = vmax.f32 %v3017_v20, %v2199_v11 }
 0x148   :  { %v1497_v29 = vadd.f32 %v2822_v4, %v1426_v42  ;;  %v1029_v30 = vpop.f32.mrf.mxu0  ;;  %v1317_v58 = vpop.f32.mrf.mxu1 }
 0x149   :  { %v2009_v19 = vpack.c.bf16 %v1535_v41, %v1534_v28  ;;  %v1435_v57 = vmax.f32 %v1434_v43, %v1314_v55  ;;  %v1443_v12 = vmax.f32 %v1442_v44, %v3018_v31  ;;  %v1502_v45 = vadd.f32 %v2822_v4, %v1441_v62  ;;  %v3030_v43 = vld [vmem:[#allocation20_spill] sm:$0xff]  ;;  %v3031_v44 = vld [vmem:[#allocation21_spill] sm:$0xff] }
 0x14a   :  { %v1533_v32 = vmax.f32 %v1497_v29, 0.0  ;;  %v1436_v21 = vmax.f32 %v3019_v46, %v1029_v30  ;;  %v2202_v22 = vpop.f32.mrf.mxu0  ;;  %v2274_v0 = vpop.f32.mrf.mxu1  ;;  %v3033_v46 = vld [vmem:[#allocation23_spill] sm:$0xff] }
 0x14b   :  { %2051 = vst [vmem:[%s2986_s3 + $0x58] sm:$0xff] %v2009_v19   ;;  %v1444_v47 = vmax.f32 %v1443_v12, %v2271_v7  ;;  %v1451_v9 = vmax.f32 %v3020_v34, %v2202_v22  ;;  %v1500_v23 = vadd.f32 %v2822_v4, %v1435_v57  ;;  %v1538_v36 = vmax.f32 %v1502_v45, 0.0  ;;  %v3029_v7 = vld [vmem:[#allocation18_spill] sm:$0xff] }
 0x14c   :  { %v2004_v48 = vpack.c.bf16 %v1533_v32, %v1532_v8  ;;  %v1437_v33 = vmax.f32 %v1436_v21, %v3021_v14  ;;  %v1042_v61 = vpop.f32.mrf.mxu0  ;;  %v1330_v50 = vpop.f32.mrf.mxu1  ;;  %v3032_v32 = vld [vmem:[#allocation22_spill] sm:$0xff] }
 0x14d   :  { %v1503_v24 = vadd.f32 %v2822_v4, %v1444_v47  ;;  %v1452_v13 = vmax.f32 %v1451_v9, %v3022_v49  ;;  %v1445_v63 = vmax.f32 %v3023_v35, %v1042_v61  ;;  %v1536_v38 = vmax.f32 %v1500_v23, 0.0  ;;  %v3034_v9 = vld [vmem:[#allocation24_spill] sm:$0xff]  ;;  %v3036_v35 = vld [vmem:[#allocation26_spill] sm:$0xff] }
 0x14e   :  { %2050 = vst [vmem:[%s2986_s3 + $0x50] sm:$0xff] %v2004_v48   ;;  %v1438_v51 = vmax.f32 %v1437_v33, %v1317_v58  ;;  %v2203_v15 = vpop.f32.mrf.mxu0  ;;  %v2275_v52 = vpop.f32.mrf.mxu1 }
 0x14f   :  { %v1539_v1 = vmax.f32 %v1503_v24, 0.0  ;;  %v1453_v16 = vmax.f32 %v1452_v13, %v2274_v0  ;;  %v1446_v60 = vmax.f32 %v1445_v63, %v3024_v26  ;;  %v1454_v3 = vmax.f32 %v3025_v25, %v2203_v15 }
 0x150   :  { %v1501_v37 = vadd.f32 %v2822_v4, %v1438_v51  ;;  %v1045_v53 = vpop.f32.mrf.mxu0  ;;  %v1333_v54 = vpop.f32.mrf.mxu1 }
 0x151   :  { %v2019_v5 = vpack.c.bf16 %v1539_v1, %v1538_v36  ;;  %v1455_v17 = vmax.f32 %v1454_v3, %v3026_v59  ;;  %v1506_v55 = vadd.f32 %v2822_v4, %v1453_v16  ;;  %v1447_v18 = vmax.f32 %v1446_v60, %v1330_v50  ;;  %v3035_v50 = vld [vmem:[#allocation25_spill] sm:$0xff] }
 0x152   :  { %v1537_v39 = vmax.f32 %v1501_v37, 0.0  ;;  %v1448_v40 = vmax.f32 %v3027_v2, %v1045_v53  ;;  %v2206_v27 = vpop.f32.mrf.mxu0  ;;  %v2278_v56 = vpop.f32.mrf.mxu1 }
 0x153   :  { %2053 = vst [vmem:[%s2986_s3 + $0x68] sm:$0xff] %v2019_v5   ;;  %v1456_v28 = vmax.f32 %v1455_v17, %v2275_v52  ;;  %v1463_v42 = vmax.f32 %v3028_v6, %v2206_v27  ;;  %v1542_v58 = vmax.f32 %v1506_v55, 0.0  ;;  %v1504_v19 = vadd.f32 %v2822_v4, %v1447_v18 }
 0x154   :  { %v2014_v11 = vpack.c.bf16 %v1537_v39, %v1536_v38  ;;  %v1449_v41 = vmax.f32 %v1448_v40, %v3029_v7  ;;  %v1058_v62 = vpop.f32.mrf.mxu0  ;;  %v1346_v30 = vpop.f32.mrf.mxu1 }
 0x155   :  { %v1507_v10 = vadd.f32 %v2822_v4, %v1456_v28  ;;  %v1464_v20 = vmax.f32 %v1463_v42, %v3030_v43  ;;  %v1457_v29 = vmax.f32 %v3031_v44, %v1058_v62  ;;  %v1540_v14 = vmax.f32 %v1504_v19, 0.0 }
 0x156   :  { %2052 = vst [vmem:[%s2986_s3 + $0x60] sm:$0xff] %v2014_v11   ;;  %v1450_v57 = vmax.f32 %v1449_v41, %v1333_v54  ;;  %v2207_v31 = vpop.f32.mrf.mxu0  ;;  %v2279_v34 = vpop.f32.mrf.mxu1 }
 0x157   :  { %v1543_v12 = vmax.f32 %v1507_v10, 0.0  ;;  %v1465_v8 = vmax.f32 %v1464_v20, %v2278_v56  ;;  %v1458_v45 = vmax.f32 %v1457_v29, %v3032_v32  ;;  %v1466_v21 = vmax.f32 %v3033_v46, %v2207_v31 }
 0x158   :  { %v1505_v22 = vadd.f32 %v2822_v4, %v1450_v57  ;;  %v1061_v0 = vpop.f32.mrf.mxu0  ;;  %v1349_v51 = vpop.f32.mrf.mxu1 }
 0x159   :  { %v2029_v47 = vpack.c.bf16 %v1543_v12, %v1542_v58  ;;  %v1467_v48 = vmax.f32 %v1466_v21, %v3034_v9  ;;  %v1459_v61 = vmax.f32 %v1458_v45, %v1346_v30  ;;  %v1460_v23 = vmax.f32 %v3035_v50, %v1061_v0 }
 0x15a   :  { %v1541_v33 = vmax.f32 %v1505_v22, 0.0  ;;  %v1510_v24 = vadd.f32 %v2822_v4, %v1465_v8 }
 0x15b   :  { %2055 = vst [vmem:[%s2986_s3 + $0x78] sm:$0xff] %v2029_v47   ;;  %v1468_v49 = vmax.f32 %v1467_v48, %v2279_v34  ;;  %v1461_v63 = vmax.f32 %v1460_v23, %v3036_v35  ;;  %v1508_v15 = vadd.f32 %v2822_v4, %v1459_v61 }
 0x15c   :  { %v2024_v13 = vpack.c.bf16 %v1541_v33, %v1540_v14  ;;  %v1546_v1 = vmax.f32 %v1510_v24, 0.0 }
 0x15d   :  { %v1511_v36 = vadd.f32 %v2822_v4, %v1468_v49  ;;  %v1462_v52 = vmax.f32 %v1461_v63, %v1349_v51  ;;  %v1544_v25 = vmax.f32 %v1508_v15, 0.0 }
 0x15e   :  { %2054 = vst [vmem:[%s2986_s3 + $0x70] sm:$0xff] %v2024_v13  }
 0x15f   :  { %v1547_v16 = vmax.f32 %v1511_v36, 0.0  ;;  %v1509_v26 = vadd.f32 %v2822_v4, %v1462_v52 }
 0x161   :  { %v2039_v60 = vpack.c.bf16 %v1547_v16, %v1546_v1  ;;  %v1545_v3 = vmax.f32 %v1509_v26, 0.0 }
 0x163   :  { %2057 = vst [vmem:[%s2986_s3 + $0x88] sm:$0xff] %v2039_v60   ;;  %v2034_v37 = vpack.c.bf16 %v1545_v3, %v1544_v25 }
 0x165   :  { %2056 = vst [vmem:[%s2986_s3 + $0x80] sm:$0xff] %v2034_v37  }

// kernel: cnn_forward.4
= control target key start
LH: loop header
LB: loop body
LE: loop exit
PB: predicated region body
PF: predicated region fallthrough
CT: control target
= control target key end

     0   :  { %s684_s1 = inlined_call_operand.vmem [shape: bf16[256,128], index: 1, kind: input, shape index: {}]   ;;  %s685_s0 = inlined_call_operand.vmem [shape: bf16[4,32,256], index: 0, kind: input, shape index: {}]   ;;  %s686_s2 = inlined_call_operand.vmem [shape: f32[1,128], index: 2, kind: input, shape index: {}]   ;;  %s687_s3 = inlined_call_operand.vmem [shape: bf16[32,128], index: 3, kind: output, shape index: {}]  }
   0x1   :  { %v519_v0 = vld [vmem:[%s684_s1 + $0x78] sm:$0xff]   ;;  %v521_v2 = vld [vmem:[%s684_s1 + $0x70] sm:$0xff]   ;;  %v523_v4 = vld [vmem:[%s684_s1 + $0x68] sm:$0xff]  }
   0x2   :  { %v520_v1 = vld [vmem:[%s684_s1 + $0x38] sm:$0xff]   ;;  %439 = vmatprep.subr.bf16.mxu0 %v519_v0  ;;  %503 = vmatprep.subr.bf16.mxu1 %v519_v0  ;;  %v522_v3 = vld [vmem:[%s684_s1 + $0x30] sm:$0xff]   ;;  %v524_v5 = vld [vmem:[%s684_s1 + $0x28] sm:$0xff]  }
   0x3   :  { %440 = vmatpush3.bf16.msra.mxu0 %v520_v1  ;;  %511 = vmatpush3.bf16.msra.mxu1 %v520_v1  ;;  %v525_v6 = vld [vmem:[%s684_s1 + $0x60] sm:$0xff]   ;;  %v527_v8 = vld [vmem:[%s684_s1 + $0x58] sm:$0xff]   ;;  %v529_v10 = vld [vmem:[%s684_s1 + $0x50] sm:$0xff]  }
   0x4   :  { %441 = vmatprep.subr.bf16.mxu0 %v521_v2  ;;  %504 = vmatprep.subr.bf16.mxu1 %v521_v2  ;;  %v526_v7 = vld [vmem:[%s684_s1 + $0x20] sm:$0xff]   ;;  %v528_v9 = vld [vmem:[%s684_s1 + $0x18] sm:$0xff]   ;;  %v530_v13 = vld [vmem:[%s684_s1 + $0x10] sm:$0xff]  }
   0x5   :  { %v537_v11 = vld [vmem:[%s685_s0 + $0x4] ss:$8 sps:$4 sm:$0xff]   ;;  %v535_v18 = vld [vmem:[%s685_s0] ss:$8 sps:$4 sm:$0xff]   ;;  %v541_v20 = vld [vmem:[%s685_s0 + $0x14] ss:$8 sps:$4 sm:$0xff]  }
   0x6   :  { %v540_v12 = vld [vmem:[%s685_s0 + $0x44] ss:$8 sps:$4 sm:$0xff]   ;;  %271 = vmatprep.mubr.bf16.mxu0 %v537_v11  ;;  %v538_v19 = vld [vmem:[%s685_s0 + $0x40] ss:$8 sps:$4 sm:$0xff]   ;;  %v543_v21 = vld [vmem:[%s685_s0 + $0x54] ss:$8 sps:$4 sm:$0xff]  }
   0x7   :  { %442 = vmatpush3.bf16.msra.mxu0 %v522_v3  ;;  %512 = vmatpush3.bf16.msra.mxu1 %v522_v3  ;;  %v531_v14 = vld [vmem:[%s684_s1 + $0x48] sm:$0xff]   ;;  %v533_v16 = vld [vmem:[%s684_s1 + $0x40] sm:$0xff]   ;;  %v545_v22 = vld [vmem:[%s685_s0 + $0x10] ss:$8 sps:$4 sm:$0xff]  }
   0x8   :  { %443 = vmatprep.subr.bf16.mxu0 %v523_v4  ;;  %505 = vmatprep.subr.bf16.mxu1 %v523_v4  ;;  %v532_v15 = vld [vmem:[%s684_s1 + $0x8] sm:$0xff]   ;;  %v534_v17 = vld [vmem:[%s684_s1] sm:$0xff]   ;;  %v546_v23 = vld [vmem:[%s685_s0 + $0x50] ss:$8 sps:$4 sm:$0xff]  }
   0x9   :  { %303 = vmatprep.mubr.bf16.mxu1 %v540_v12  ;;  %v547_v24 = vld [vmem:[%s685_s0 + $0x24] ss:$8 sps:$4 sm:$0xff]   ;;  %v551_v26 = vld [vmem:[%s685_s0 + $0x20] ss:$8 sps:$4 sm:$0xff]   ;;  %v553_v28 = vld [vmem:[%s685_s0 + $0x34] ss:$8 sps:$4 sm:$0xff]  }
   0xa   :  { %v549_v25 = vld [vmem:[%s685_s0 + $0x64] ss:$8 sps:$4 sm:$0xff]   ;;  %v552_v27 = vld [vmem:[%s685_s0 + $0x60] ss:$8 sps:$4 sm:$0xff]   ;;  %v555_v29 = vld [vmem:[%s685_s0 + $0x74] ss:$8 sps:$4 sm:$0xff]  }
   0xb   :  { %444 = vmatpush3.bf16.msra.mxu0 %v524_v5  ;;  %513 = vmatpush3.bf16.msra.mxu1 %v524_v5  ;;  %v557_v30 = vld [vmem:[%s685_s0 + $0x30] ss:$8 sps:$4 sm:$0xff]   ;;  %v419_v5 = vld [vmem:[%s686_s2] ss:$0 sm:$0xff] }
   0xc   :  { %445 = vmatprep.subr.bf16.mxu0 %v525_v6  ;;  %506 = vmatprep.subr.bf16.mxu1 %v525_v6  ;;  %v558_v31 = vld [vmem:[%s685_s0 + $0x70] ss:$8 sps:$4 sm:$0xff]  }
   0xf   :  { %446 = vmatpush3.bf16.msra.mxu0 %v526_v7  ;;  %514 = vmatpush3.bf16.msra.mxu1 %v526_v7 }
  0x10   :  { %447 = vmatprep.subr.bf16.mxu0 %v527_v8  ;;  %507 = vmatprep.subr.bf16.mxu1 %v527_v8 }
  0x13   :  { %448 = vmatpush3.bf16.msra.mxu0 %v528_v9  ;;  %515 = vmatpush3.bf16.msra.mxu1 %v528_v9 }
  0x14   :  { %449 = vmatprep.subr.bf16.mxu0 %v529_v10  ;;  %508 = vmatprep.subr.bf16.mxu1 %v529_v10 }
  0x17   :  { %450 = vmatpush3.bf16.msra.mxu0 %v530_v13  ;;  %516 = vmatpush3.bf16.msra.mxu1 %v530_v13 }
  0x18   :  { %451 = vmatprep.subr.bf16.mxu0 %v531_v14  ;;  %509 = vmatprep.subr.bf16.mxu1 %v531_v14 }
  0x1b   :  { %452 = vmatpush3.bf16.msra.mxu0 %v532_v15  ;;  %517 = vmatpush3.bf16.msra.mxu1 %v532_v15 }
  0x1c   :  { %453 = vmatprep.subr.bf16.mxu0 %v533_v16  ;;  %510 = vmatprep.subr.bf16.mxu1 %v533_v16 }
  0x1f   :  { %454 = vmatpush3.bf16.msra.mxu0 %v534_v17  ;;  %518 = vmatpush3.bf16.msra.mxu1 %v534_v17 }
  0x22   :  { %272 = vmatmul.mubr.bf16.vlgmr.msra.gmra.mxu0 %v535_v18  ;;  %304 = vmatmul.mubr.bf16.vlgmr.msra.gmra.mxu1 %v538_v19 }
  0x23   :  { %279 = vmatprep.mubr.bf16.mxu0 %v541_v20  ;;  %311 = vmatprep.mubr.bf16.mxu1 %v543_v21 }
  0x2a   :  { %280 = vmatmul.mubr.bf16.gmra.mxu0 %v545_v22  ;;  %312 = vmatmul.mubr.bf16.gmra.mxu1 %v546_v23 }
  0x2b   :  { %287 = vmatprep.mubr.bf16.mxu0 %v547_v24  ;;  %319 = vmatprep.mubr.bf16.mxu1 %v549_v25 }
  0x32   :  { %288 = vmatmul.mubr.bf16.gmra.mxu0 %v551_v26  ;;  %320 = vmatmul.mubr.bf16.gmra.mxu1 %v552_v27 }
  0x33   :  { %295 = vmatprep.mubr.bf16.mxu0 %v553_v28  ;;  %327 = vmatprep.mubr.bf16.mxu1 %v555_v29 }
  0x3a   :  { %296 = vmatmul.mubr.bf16.gmra.mxu0 %v557_v30  ;;  %328 = vmatmul.mubr.bf16.gmra.mxu1 %v558_v31 }
  0xe2   :  { %v455_v32 = vpop.f32.mrf.mxu0  ;;  %v479_v33 = vpop.f32.mrf.mxu1 }
  0xe4   :  { %v456_v34 = vpop.f32.mrf.mxu0  ;;  %v480_v35 = vpop.f32.mrf.mxu1 }
  0xe5   :  { %v457_v52 = vadd.f32 %v456_v34, %v455_v32  ;;  %v481_v56 = vadd.f32 %v480_v35, %v479_v33 }
  0xe6   :  { %v458_v36 = vpop.f32.mrf.mxu0  ;;  %v482_v37 = vpop.f32.mrf.mxu1 }
  0xe8   :  { %v459_v38 = vpop.f32.mrf.mxu0  ;;  %v483_v39 = vpop.f32.mrf.mxu1 }
  0xe9   :  { %v460_v60 = vadd.f32 %v459_v38, %v458_v36  ;;  %v484_v2 = vadd.f32 %v483_v39, %v482_v37 }
  0xea   :  { %v461_v40 = vpop.f32.mrf.mxu0  ;;  %v485_v41 = vpop.f32.mrf.mxu1 }
  0xec   :  { %v462_v42 = vpop.f32.mrf.mxu0  ;;  %v486_v43 = vpop.f32.mrf.mxu1 }
  0xed   :  { %v463_v8 = vadd.f32 %v462_v42, %v461_v40  ;;  %v487_v14 = vadd.f32 %v486_v43, %v485_v41 }
  0xee   :  { %v464_v44 = vpop.f32.mrf.mxu0  ;;  %v488_v45 = vpop.f32.mrf.mxu1 }
  0xf0   :  { %v465_v46 = vpop.f32.mrf.mxu0  ;;  %v489_v47 = vpop.f32.mrf.mxu1 }
  0xf1   :  { %v466_v18 = vadd.f32 %v465_v46, %v464_v44  ;;  %v490_v24 = vadd.f32 %v489_v47, %v488_v45 }
  0xf2   :  { %v467_v48 = vpop.f32.mrf.mxu0  ;;  %v491_v49 = vpop.f32.mrf.mxu1 }
  0xf4   :  { %v468_v50 = vpop.f32.mrf.mxu0  ;;  %v492_v51 = vpop.f32.mrf.mxu1 }
  0xf5   :  { %v469_v53 = vadd.f32 %v468_v50, %v467_v48  ;;  %v493_v61 = vadd.f32 %v492_v51, %v491_v49 }
  0xf6   :  { %v470_v54 = vpop.f32.mrf.mxu0  ;;  %v494_v55 = vpop.f32.mrf.mxu1 }
  0xf7   :  { %v336_v57 = vmax.f32 %v457_v52, %v469_v53 }
  0xf8   :  { %v471_v58 = vpop.f32.mrf.mxu0  ;;  %v495_v59 = vpop.f32.mrf.mxu1 }
  0xf9   :  { %v337_v62 = vmax.f32 %v336_v57, %v481_v56  ;;  %v472_v63 = vadd.f32 %v471_v58, %v470_v54  ;;  %v496_v9 = vadd.f32 %v495_v59, %v494_v55 }
  0xfa   :  { %v473_v0 = vpop.f32.mrf.mxu0  ;;  %v497_v1 = vpop.f32.mrf.mxu1 }
  0xfb   :  { %v338_v3 = vmax.f32 %v337_v62, %v493_v61  ;;  %v339_v4 = vmax.f32 %v460_v60, %v472_v63 }
  0xfc   :  { %v474_v6 = vpop.f32.mrf.mxu0  ;;  %v498_v7 = vpop.f32.mrf.mxu1 }
  0xfd   :  { %v340_v10 = vmax.f32 %v339_v4, %v484_v2  ;;  %v475_v11 = vadd.f32 %v474_v6, %v473_v0  ;;  %v355_v15 = vadd.f32 %v419_v5, %v338_v3  ;;  %v499_v21 = vadd.f32 %v498_v7, %v497_v1 }
  0xfe   :  { %v476_v12 = vpop.f32.mrf.mxu0  ;;  %v500_v13 = vpop.f32.mrf.mxu1 }
  0xff   :  { %v341_v16 = vmax.f32 %v340_v10, %v496_v9  ;;  %v342_v17 = vmax.f32 %v463_v8, %v475_v11  ;;  %v359_v26 = vmax.f32 %v355_v15, 0.0 }
 0x100   :  { %v477_v19 = vpop.f32.mrf.mxu0  ;;  %v501_v25 = vpop.f32.mrf.mxu1 }
 0x101   :  { %v356_v20 = vadd.f32 %v419_v5, %v341_v16  ;;  %v343_v22 = vmax.f32 %v342_v17, %v487_v14  ;;  %v478_v23 = vadd.f32 %v477_v19, %v476_v12  ;;  %v502_v31 = vadd.f32 %v501_v25, %v500_v13 }
 0x103   :  { %v360_v27 = vmax.f32 %v356_v20, 0.0  ;;  %v344_v28 = vmax.f32 %v343_v22, %v499_v21  ;;  %v345_v29 = vmax.f32 %v466_v18, %v478_v23 }
 0x105   :  { %v431_v30 = vpack.c.bf16 %v360_v27, %v359_v26  ;;  %v346_v32 = vmax.f32 %v345_v29, %v490_v24  ;;  %v357_v33 = vadd.f32 %v419_v5, %v344_v28 }
 0x107   :  { %432 = vst [vmem:[%s687_s3] sm:$0xff] %v431_v30   ;;  %v347_v34 = vmax.f32 %v346_v32, %v502_v31  ;;  %v361_v36 = vmax.f32 %v357_v33, 0.0 }
 0x109   :  { %v358_v35 = vadd.f32 %v419_v5, %v347_v34 }
 0x10b   :  { %v362_v37 = vmax.f32 %v358_v35, 0.0 }
 0x10d   :  { %v436_v38 = vpack.c.bf16 %v362_v37, %v361_v36 }
 0x10f   :  { %438 = vst [vmem:[%s687_s3 + $0x8] sm:$0xff] %v436_v38  }

// kernel: cnn_forward.5
= control target key start
LH: loop header
LB: loop body
LE: loop exit
PB: predicated region body
PF: predicated region fallthrough
CT: control target
= control target key end

     0   :  { %v293_v28 = vlaneseq  ;;  %v2142_v36 = vmov 1966171168   ;;  %s2623_s0 = inlined_call_operand.vmem [shape: bf16[2,2048], index: 0, kind: input, shape index: {}]   ;;  %s2624_s1 = inlined_call_operand.vmem [shape: bf16[2048,128], index: 1, kind: input, shape index: {}]   ;;  %s2625_s2 = inlined_call_operand.vmem [shape: f32[1,128], index: 2, kind: input, shape index: {}]   ;;  %s2626_s3 = inlined_call_operand.vmem [shape: bf16[128,128], index: 3, kind: input, shape index: {}]   ;;  %s2627_s4 = inlined_call_operand.vmem [shape: f32[1,128], index: 4, kind: input, shape index: {}]   ;;  %s2628_s5 = inlined_call_operand.hbm [shape: f32[2,128], index: 5, kind: output, shape index: {}]  }
   0x1   :  { %v1978_v0 = vld [vmem:[%s2624_s1 + $0x78] sm:$0xff]   ;;  %v1982_v4 = vld [vmem:[%s2624_s1 + $0x70] sm:$0xff]   ;;  %v1986_v8 = vld [vmem:[%s2624_s1 + $0x68] sm:$0xff]   ;;  %v291_v37 = vunpack.c.l.s4 %v2142_v36 }
   0x2   :  { %v1979_v1 = vld [vmem:[%s2624_s1 + $0xf8] sm:$0xff]   ;;  %1769 = vmatprep.subr.bf16.mxu0 %v1978_v0  ;;  %v1983_v5 = vld [vmem:[%s2624_s1 + $0xf0] sm:$0xff]   ;;  %v1987_v9 = vld [vmem:[%s2624_s1 + $0xe8] sm:$0xff]   ;;  %v294_v33 = vshrl.u32 %v293_v28, 7 }
   0x3   :  { %v1980_v2 = vld [vmem:[%s2624_s1 + $0x38] sm:$0xff]   ;;  %1791 = vmatprep.subr.bf16.mxu1 %v1979_v1  ;;  %v1984_v6 = vld [vmem:[%s2624_s1 + $0x30] sm:$0xff]   ;;  %v1988_v10 = vld [vmem:[%s2624_s1 + $0x28] sm:$0xff]   ;;  %v292_v40 = vunpack.c.0.s8 %v291_v37 }
   0x4   :  { %v1981_v3 = vld [vmem:[%s2624_s1 + $0xb8] sm:$0xff]   ;;  %1770 = vmatpush3.bf16.msra.mxu0 %v1980_v2  ;;  %v1985_v7 = vld [vmem:[%s2624_s1 + $0xb0] sm:$0xff]   ;;  %v1989_v11 = vld [vmem:[%s2624_s1 + $0xa8] sm:$0xff]  }
   0x5   :  { %1792 = vmatpush3.bf16.msra.mxu1 %v1981_v3  ;;  %1771 = vmatprep.subr.bf16.mxu0 %v1982_v4  ;;  %v1990_v12 = vld [vmem:[%s2624_s1 + $0x60] sm:$0xff]   ;;  %v1994_v16 = vld [vmem:[%s2624_s1 + $0x58] sm:$0xff]   ;;  %v1998_v20 = vld [vmem:[%s2624_s1 + $0x50] sm:$0xff]   ;;  %v2281_v41 = vsub.s32 %v292_v40, %v294_v33 }
   0x6   :  { %1793 = vmatprep.subr.bf16.mxu1 %v1983_v5  ;;  %v1991_v13 = vld [vmem:[%s2624_s1 + $0xe0] sm:$0xff]   ;;  %v1995_v17 = vld [vmem:[%s2624_s1 + $0xd8] sm:$0xff]   ;;  %v1999_v21 = vld [vmem:[%s2624_s1 + $0xd0] sm:$0xff]  }
   0x7   :  { %v1992_v14 = vld [vmem:[%s2624_s1 + $0x20] sm:$0xff]   ;;  %v1996_v18 = vld [vmem:[%s2624_s1 + $0x18] sm:$0xff]   ;;  %v2000_v22 = vld [vmem:[%s2624_s1 + $0x10] sm:$0xff]  }
   0x8   :  { %1772 = vmatpush3.bf16.msra.mxu0 %v1984_v6  ;;  %v1993_v15 = vld [vmem:[%s2624_s1 + $0xa0] sm:$0xff]   ;;  %v1997_v19 = vld [vmem:[%s2624_s1 + $0x98] sm:$0xff]   ;;  %v2001_v23 = vld [vmem:[%s2624_s1 + $0x90] sm:$0xff]  }
   0x9   :  { %1794 = vmatpush3.bf16.msra.mxu1 %v1985_v7  ;;  %1773 = vmatprep.subr.bf16.mxu0 %v1986_v8  ;;  %v2002_v24 = vld [vmem:[%s2624_s1 + $0x48] sm:$0xff]   ;;  %v2006_v29 = vld [vmem:[%s2624_s1 + $0x40] sm:$0xff]   ;;  %v2011_v35 = vld [vmem:[%s2624_s1 + $0x178] sm:$0xff]  }
   0xa   :  { %1795 = vmatprep.subr.bf16.mxu1 %v1987_v9  ;;  %v2003_v25 = vld [vmem:[%s2624_s1 + $0xc8] sm:$0xff]   ;;  %v2007_v30 = vld [vmem:[%s2624_s1 + $0xc0] sm:$0xff]   ;;  %v2012_v38 = vld [vmem:[%s2624_s1 + $0x1f8] sm:$0xff]  }
   0xb   :  { %v2004_v26 = vld [vmem:[%s2624_s1 + $0x8] sm:$0xff]   ;;  %v2008_v31 = vld [vmem:[%s2624_s1] sm:$0xff]   ;;  %v2013_v47 = vld [vmem:[%s2624_s1 + $0x138] sm:$0xff]  }
   0xc   :  { %1774 = vmatpush3.bf16.msra.mxu0 %v1988_v10  ;;  %v2005_v27 = vld [vmem:[%s2624_s1 + $0x88] sm:$0xff]   ;;  %v2009_v32 = vld [vmem:[%s2624_s1 + $0x80] sm:$0xff]   ;;  %v2014_v49 = vld [vmem:[%s2624_s1 + $0x1b8] sm:$0xff]  }
   0xd   :  { %1796 = vmatpush3.bf16.msra.mxu1 %v1989_v11  ;;  %1775 = vmatprep.subr.bf16.mxu0 %v1990_v12  ;;  %v22_v34 = vld [vmem:[%s2623_s0] sm:$0xff]  ;;  %v2015_v52 = vld [vmem:[%s2624_s1 + $0x170] sm:$0xff]   ;;  %v2019_v58 = vld [vmem:[%s2624_s1 + $0x168] sm:$0xff]  }
   0xe   :  { %1797 = vmatprep.subr.bf16.mxu1 %v1991_v13  ;;  %v289_v39 = vcombine.high %v22_v34, %v22_v34  ;;  %v296_v42 = vrot.slane %v22_v34, %v2281_v41  ;;  %v2016_v54 = vld [vmem:[%s2624_s1 + $0x1f0] sm:$0xff]   ;;  %v2020_v59 = vld [vmem:[%s2624_s1 + $0x1e8] sm:$0xff]   ;;  %v2023_v62 = vld [vmem:[%s2624_s1 + $0x160] sm:$0xff]  }
   0xf   :  { %v2017_v55 = vld [vmem:[%s2624_s1 + $0x130] sm:$0xff]   ;;  %v2021_v60 = vld [vmem:[%s2624_s1 + $0x128] sm:$0xff]   ;;  %v2024_v63 = vld [vmem:[%s2624_s1 + $0x1e0] sm:$0xff]  }
  0x10   :  { %1776 = vmatpush3.bf16.msra.mxu0 %v1992_v14  ;;  %v2285_v43 = vrot.slane %v289_v39, %v2281_v41  ;;  %v304_v44 = vcombine.high %v296_v42, %v296_v42  ;;  %v312_v45 = vrot.slane %v296_v42, %v2281_v41  ;;  %v2018_v57 = vld [vmem:[%s2624_s1 + $0x1b0] sm:$0xff]   ;;  %v2022_v61 = vld [vmem:[%s2624_s1 + $0x1a8] sm:$0xff]   ;;  %v2025_v0 = vld [vmem:[%s2624_s1 + $0x120] sm:$0xff]  }
  0x11   :  { %1798 = vmatpush3.bf16.msra.mxu1 %v1993_v15  ;;  %1777 = vmatprep.subr.bf16.mxu0 %v1994_v16  ;;  %v2026_v1 = vld [vmem:[%s2624_s1 + $0x1a0] sm:$0xff]   ;;  %v2027_v2 = vld [vmem:[%s2624_s1 + $0x158] sm:$0xff]   ;;  %v2031_v6 = vld [vmem:[%s2624_s1 + $0x150] sm:$0xff]  }
  0x12   :  { %1799 = vmatprep.subr.bf16.mxu1 %v1995_v17  ;;  %v305_v46 = vcombine.high %v2285_v43, %v2285_v43  ;;  %v326_v48 = vrot.slane %v304_v44, %v2281_v41  ;;  %v334_v51 = vcombine.high %v312_v45, %v312_v45  ;;  %v2028_v3 = vld [vmem:[%s2624_s1 + $0x1d8] sm:$0xff]   ;;  %v2032_v7 = vld [vmem:[%s2624_s1 + $0x1d0] sm:$0xff]   ;;  %v2035_v10 = vld [vmem:[%s2624_s1 + $0x148] sm:$0xff]  }
  0x13   :  { %v2029_v4 = vld [vmem:[%s2624_s1 + $0x118] sm:$0xff]   ;;  %v2033_v8 = vld [vmem:[%s2624_s1 + $0x110] sm:$0xff]   ;;  %v2036_v11 = vld [vmem:[%s2624_s1 + $0x1c8] sm:$0xff]  }
  0x14   :  { %1778 = vmatpush3.bf16.msra.mxu0 %v1996_v18  ;;  %v333_v50 = vrot.slane %v305_v46, %v2281_v41  ;;  %1203 = vmatprep.mubr.bf16.mxu0 %v326_v48  ;;  %v336_v53 = vcombine.high %v326_v48, %v326_v48  ;;  %v2030_v5 = vld [vmem:[%s2624_s1 + $0x198] sm:$0xff]   ;;  %v2034_v9 = vld [vmem:[%s2624_s1 + $0x190] sm:$0xff]   ;;  %v2037_v12 = vld [vmem:[%s2624_s1 + $0x108] sm:$0xff]   ;;  %v319_v18 = vrot.slane %v2285_v43, %v2281_v41 }
  0x15   :  { %1800 = vmatpush3.bf16.msra.mxu1 %v1997_v19  ;;  %1779 = vmatprep.subr.bf16.mxu0 %v1998_v20  ;;  %v2038_v13 = vld [vmem:[%s2624_s1 + $0x188] sm:$0xff]   ;;  %v2039_v14 = vld [vmem:[%s2624_s1 + $0x140] sm:$0xff]   ;;  %v2043_v19 = vld [vmem:[%s2624_s1 + $0x278] sm:$0xff]  }
  0x16   :  { %1801 = vmatprep.subr.bf16.mxu1 %v1999_v21  ;;  %v337_v56 = vcombine.high %v333_v50, %v333_v50  ;;  %1243 = vmatprep.mubr.bf16.mxu1 %v336_v53  ;;  %v2040_v15 = vld [vmem:[%s2624_s1 + $0x1c0] sm:$0xff]   ;;  %v2044_v20 = vld [vmem:[%s2624_s1 + $0x2f8] sm:$0xff]   ;;  %v2051_v28 = vld [vmem:[%s2624_s1 + $0x268] sm:$0xff]  }
  0x17   :  { %v2041_v16 = vld [vmem:[%s2624_s1 + $0x100] sm:$0xff]   ;;  %v2045_v21 = vld [vmem:[%s2624_s1 + $0x238] sm:$0xff]   ;;  %v2063_v40 = vld [vmem:[%s2624_s1 + $0x250] sm:$0xff]  }
  0x18   :  { %1780 = vmatpush3.bf16.msra.mxu0 %v2000_v22  ;;  %v2042_v17 = vld [vmem:[%s2624_s1 + $0x180] sm:$0xff]   ;;  %v2046_v22 = vld [vmem:[%s2624_s1 + $0x2b8] sm:$0xff]   ;;  %v2064_v42 = vld [vmem:[%s2624_s1 + $0x2d0] sm:$0xff]  }
  0x19   :  { %1802 = vmatpush3.bf16.msra.mxu1 %v2001_v23  ;;  %1781 = vmatprep.subr.bf16.mxu0 %v2002_v24  ;;  %v335_v23 = vcombine.high %v319_v18, %v319_v18  ;;  %v2047_v24 = vld [vmem:[%s2624_s1 + $0x270] sm:$0xff]   ;;  %v2056_v33 = vld [vmem:[%s2624_s1 + $0x2e0] sm:$0xff]   ;;  %v2059_v36 = vld [vmem:[%s2624_s1 + $0x258] sm:$0xff]  }
  0x1a   :  { %1803 = vmatprep.subr.bf16.mxu1 %v2003_v25  ;;  %v2048_v25 = vld [vmem:[%s2624_s1 + $0x2f0] sm:$0xff]   ;;  %v2057_v34 = vld [vmem:[%s2624_s1 + $0x220] sm:$0xff]   ;;  %v2060_v37 = vld [vmem:[%s2624_s1 + $0x2d8] sm:$0xff]  }
  0x1b   :  { %v2062_v39 = vld [vmem:[%s2624_s1 + $0x298] sm:$0xff]   ;;  %v2065_v43 = vld [vmem:[%s2624_s1 + $0x210] sm:$0xff]   ;;  %v23_v46 = vld [vmem:[%s2623_s0 + $0x8] sm:$0xff] }
  0x1c   :  { %1782 = vmatpush3.bf16.msra.mxu0 %v2004_v26  ;;  %v2049_v26 = vld [vmem:[%s2624_s1 + $0x230] sm:$0xff]   ;;  %v345_v48 = vrot.slane %v23_v46, %v2281_v41 }
  0x1d   :  { %1804 = vmatpush3.bf16.msra.mxu1 %v2005_v27  ;;  %1783 = vmatprep.subr.bf16.mxu0 %v2006_v29  ;;  %v2050_v27 = vld [vmem:[%s2624_s1 + $0x2b0] sm:$0xff]   ;;  %v2052_v29 = vld [vmem:[%s2624_s1 + $0x2e8] sm:$0xff]  }
  0x1e   :  { %1805 = vmatprep.subr.bf16.mxu1 %v2007_v30  ;;  %v2053_v30 = vld [vmem:[%s2624_s1 + $0x228] sm:$0xff]   ;;  %v2066_v44 = vld [vmem:[%s2624_s1 + $0x290] sm:$0xff]  }
  0x20   :  { %1784 = vmatpush3.bf16.msra.mxu0 %v2008_v31  ;;  %v2054_v31 = vld [vmem:[%s2624_s1 + $0x2a8] sm:$0xff]  }
  0x21   :  { %1806 = vmatpush3.bf16.msra.mxu1 %v2009_v32  ;;  %1813 = vmatprep.subr.bf16.mxu0 %v2011_v35  ;;  %v2055_v32 = vld [vmem:[%s2624_s1 + $0x260] sm:$0xff]  }
  0x22   :  { %1835 = vmatprep.subr.bf16.mxu1 %v2012_v38  ;;  %v2058_v35 = vld [vmem:[%s2624_s1 + $0x2a0] sm:$0xff]   ;;  %v2061_v38 = vld [vmem:[%s2624_s1 + $0x218] sm:$0xff]  }
  0x23   :  { %1204 = vmatmul.mubr.bf16.vlgmr.msra.gmra.mxu0 %v312_v45  ;;  %v2067_v45 = vld [vmem:[%s2624_s1 + $0x248] sm:$0xff]  }
  0x24   :  { %1814 = vmatpush3.bf16.msra.mxu0 %v2013_v47  ;;  %1244 = vmatmul.mubr.bf16.vlgmr.msra.gmra.mxu1 %v334_v51  ;;  %v2068_v47 = vld [vmem:[%s2624_s1 + $0x2c8] sm:$0xff]  }
  0x25   :  { %1815 = vmatprep.subr.bf16.mxu0 %v2015_v52  ;;  %1836 = vmatpush3.bf16.msra.mxu1 %v2014_v49  ;;  %v338_v49 = vcombine.high %v23_v46, %v23_v46  ;;  %v2070_v51 = vld [vmem:[%s2624_s1 + $0x288] sm:$0xff]   ;;  %v353_v52 = vcombine.high %v345_v48, %v345_v48 }
  0x26   :  { %1283 = vmatprep.mubr.bf16.mxu0 %v333_v50  ;;  %1837 = vmatprep.subr.bf16.mxu1 %v2016_v54  ;;  %v2069_v50 = vld [vmem:[%s2624_s1 + $0x208] sm:$0xff]   ;;  %v2071_v54 = vld [vmem:[%s2624_s1 + $0x240] sm:$0xff]  }
  0x27   :  { %1323 = vmatprep.mubr.bf16.mxu1 %v337_v56  ;;  %v2473_v53 = vrot.slane %v338_v49, %v2281_v41  ;;  %v375_v56 = vrot.slane %v353_v52, %v2281_v41 }
  0x28   :  { %1816 = vmatpush3.bf16.msra.mxu0 %v2017_v55  ;;  %v2072_v55 = vld [vmem:[%s2624_s1 + $0x2c0] sm:$0xff]  }
  0x29   :  { %1817 = vmatprep.subr.bf16.mxu0 %v2019_v58  ;;  %1838 = vmatpush3.bf16.msra.mxu1 %v2018_v57  ;;  %v354_v57 = vcombine.high %v2473_v53, %v2473_v53  ;;  %v2073_v58 = vld [vmem:[%s2624_s1 + $0x200] sm:$0xff]  }
  0x2a   :  { %1839 = vmatprep.subr.bf16.mxu1 %v2020_v59  ;;  %v2074_v59 = vld [vmem:[%s2624_s1 + $0x280] sm:$0xff]  }
  0x2c   :  { %1818 = vmatpush3.bf16.msra.mxu0 %v2021_v60  ;;  %v385_v60 = vcombine.high %v375_v56, %v375_v56 }
  0x2d   :  { %1819 = vmatprep.subr.bf16.mxu0 %v2023_v62  ;;  %1840 = vmatpush3.bf16.msra.mxu1 %v2022_v61  ;;  %v361_v61 = vrot.slane %v345_v48, %v2281_v41  ;;  %v2075_v62 = vld [vmem:[%s2624_s1 + $0x378] sm:$0xff]  }
  0x2e   :  { %1841 = vmatprep.subr.bf16.mxu1 %v2024_v63  ;;  %v2076_v63 = vld [vmem:[%s2624_s1 + $0x3f8] sm:$0xff]  }
  0x30   :  { %1820 = vmatpush3.bf16.msra.mxu0 %v2025_v0  ;;  %v382_v0 = vrot.slane %v354_v57, %v2281_v41 }
  0x31   :  { %1821 = vmatprep.subr.bf16.mxu0 %v2027_v2  ;;  %1842 = vmatpush3.bf16.msra.mxu1 %v2026_v1  ;;  %v2077_v1 = vld [vmem:[%s2624_s1 + $0x338] sm:$0xff]  }
  0x32   :  { %1843 = vmatprep.subr.bf16.mxu1 %v2028_v3  ;;  %v2078_v2 = vld [vmem:[%s2624_s1 + $0x3b8] sm:$0xff]   ;;  %v383_v3 = vcombine.high %v361_v61, %v361_v61 }
  0x34   :  { %1822 = vmatpush3.bf16.msra.mxu0 %v2029_v4  ;;  %v2079_v4 = vld [vmem:[%s2624_s1 + $0x370] sm:$0xff]  }
  0x35   :  { %1823 = vmatprep.subr.bf16.mxu0 %v2031_v6  ;;  %1844 = vmatpush3.bf16.msra.mxu1 %v2030_v5  ;;  %v2080_v5 = vld [vmem:[%s2624_s1 + $0x3f0] sm:$0xff]   ;;  %v386_v6 = vcombine.high %v382_v0, %v382_v0 }
  0x36   :  { %1845 = vmatprep.subr.bf16.mxu1 %v2032_v7  ;;  %v2081_v7 = vld [vmem:[%s2624_s1 + $0x330] sm:$0xff]  }
  0x38   :  { %1824 = vmatpush3.bf16.msra.mxu0 %v2033_v8  ;;  %v2082_v8 = vld [vmem:[%s2624_s1 + $0x3b0] sm:$0xff]  }
  0x39   :  { %1825 = vmatprep.subr.bf16.mxu0 %v2035_v10  ;;  %1846 = vmatpush3.bf16.msra.mxu1 %v2034_v9  ;;  %v2083_v9 = vld [vmem:[%s2624_s1 + $0x368] sm:$0xff]  }
  0x3a   :  { %1847 = vmatprep.subr.bf16.mxu1 %v2036_v11  ;;  %v2084_v10 = vld [vmem:[%s2624_s1 + $0x3e8] sm:$0xff]  }
  0x3b   :  { %v2085_v11 = vld [vmem:[%s2624_s1 + $0x328] sm:$0xff]  }
  0x3c   :  { %1826 = vmatpush3.bf16.msra.mxu0 %v2037_v12  ;;  %v2086_v12 = vld [vmem:[%s2624_s1 + $0x3a8] sm:$0xff]  }
  0x3d   :  { %1827 = vmatprep.subr.bf16.mxu0 %v2039_v14  ;;  %1848 = vmatpush3.bf16.msra.mxu1 %v2038_v13  ;;  %v2087_v13 = vld [vmem:[%s2624_s1 + $0x360] sm:$0xff]  }
  0x3e   :  { %1849 = vmatprep.subr.bf16.mxu1 %v2040_v15  ;;  %v2088_v14 = vld [vmem:[%s2624_s1 + $0x3e0] sm:$0xff]  }
  0x3f   :  { %v2089_v15 = vld [vmem:[%s2624_s1 + $0x320] sm:$0xff]  }
  0x40   :  { %1828 = vmatpush3.bf16.msra.mxu0 %v2041_v16  ;;  %v2090_v16 = vld [vmem:[%s2624_s1 + $0x3a0] sm:$0xff]  }
  0x41   :  { %1857 = vmatprep.subr.bf16.mxu0 %v2043_v19  ;;  %1850 = vmatpush3.bf16.msra.mxu1 %v2042_v17  ;;  %v2091_v17 = vld [vmem:[%s2624_s1 + $0x358] sm:$0xff]  }
  0x42   :  { %1879 = vmatprep.subr.bf16.mxu1 %v2044_v20  ;;  %v2093_v19 = vld [vmem:[%s2624_s1 + $0x318] sm:$0xff]  }
  0x43   :  { %1284 = vmatmul.mubr.bf16.vlgmr.msra.gmra.mxu0 %v319_v18  ;;  %v2092_v18 = vld [vmem:[%s2624_s1 + $0x3d8] sm:$0xff]  }
  0x44   :  { %1858 = vmatpush3.bf16.msra.mxu0 %v2045_v21  ;;  %1324 = vmatmul.mubr.bf16.vlgmr.msra.gmra.mxu1 %v335_v23  ;;  %v2094_v20 = vld [vmem:[%s2624_s1 + $0x398] sm:$0xff]   ;;  %v2095_v21 = vld [vmem:[%s2624_s1 + $0x350] sm:$0xff]  }
  0x45   :  { %1859 = vmatprep.subr.bf16.mxu0 %v2047_v24  ;;  %1880 = vmatpush3.bf16.msra.mxu1 %v2046_v22  ;;  %v2096_v22 = vld [vmem:[%s2624_s1 + $0x3d0] sm:$0xff]  }
  0x46   :  { %1881 = vmatprep.subr.bf16.mxu1 %v2048_v25  ;;  %1363 = vmatprep.mubr.bf16.mxu0 %v375_v56  ;;  %v2097_v23 = vld [vmem:[%s2624_s1 + $0x310] sm:$0xff]   ;;  %v2099_v25 = vld [vmem:[%s2624_s1 + $0x348] sm:$0xff]  }
  0x47   :  { %1403 = vmatprep.mubr.bf16.mxu1 %v385_v60  ;;  %v2098_v24 = vld [vmem:[%s2624_s1 + $0x390] sm:$0xff]  }
  0x48   :  { %1860 = vmatpush3.bf16.msra.mxu0 %v2049_v26  ;;  %v2100_v26 = vld [vmem:[%s2624_s1 + $0x3c8] sm:$0xff]  }
  0x49   :  { %1861 = vmatprep.subr.bf16.mxu0 %v2051_v28  ;;  %1882 = vmatpush3.bf16.msra.mxu1 %v2050_v27  ;;  %v2101_v27 = vld [vmem:[%s2624_s1 + $0x308] sm:$0xff]   ;;  %v2103_v28 = vld [vmem:[%s2624_s1 + $0x340] sm:$0xff]  }
  0x4a   :  { %1883 = vmatprep.subr.bf16.mxu1 %v2052_v29  ;;  %v2102_v29 = vld [vmem:[%s2624_s1 + $0x388] sm:$0xff]  }
  0x4c   :  { %1862 = vmatpush3.bf16.msra.mxu0 %v2053_v30  ;;  %v2104_v30 = vld [vmem:[%s2624_s1 + $0x3c0] sm:$0xff]  }
  0x4d   :  { %1863 = vmatprep.subr.bf16.mxu0 %v2055_v32  ;;  %1884 = vmatpush3.bf16.msra.mxu1 %v2054_v31 }
  0x4e   :  { %1885 = vmatprep.subr.bf16.mxu1 %v2056_v33 }
  0x50   :  { %1864 = vmatpush3.bf16.msra.mxu0 %v2057_v34 }
  0x51   :  { %1865 = vmatprep.subr.bf16.mxu0 %v2059_v36  ;;  %1886 = vmatpush3.bf16.msra.mxu1 %v2058_v35 }
  0x52   :  { %1887 = vmatprep.subr.bf16.mxu1 %v2060_v37 }
  0x54   :  { %1866 = vmatpush3.bf16.msra.mxu0 %v2061_v38 }
  0x55   :  { %1867 = vmatprep.subr.bf16.mxu0 %v2063_v40  ;;  %1888 = vmatpush3.bf16.msra.mxu1 %v2062_v39 }
  0x56   :  { %1889 = vmatprep.subr.bf16.mxu1 %v2064_v42 }
  0x58   :  { %1868 = vmatpush3.bf16.msra.mxu0 %v2065_v43 }
  0x59   :  { %1869 = vmatprep.subr.bf16.mxu0 %v2067_v45  ;;  %1890 = vmatpush3.bf16.msra.mxu1 %v2066_v44 }
  0x5a   :  { %1891 = vmatprep.subr.bf16.mxu1 %v2068_v47 }
  0x5c   :  { %1870 = vmatpush3.bf16.msra.mxu0 %v2069_v50 }
  0x5d   :  { %1871 = vmatprep.subr.bf16.mxu0 %v2071_v54  ;;  %1892 = vmatpush3.bf16.msra.mxu1 %v2070_v51 }
  0x5e   :  { %1893 = vmatprep.subr.bf16.mxu1 %v2072_v55 }
  0x60   :  { %1872 = vmatpush3.bf16.msra.mxu0 %v2073_v58 }
  0x61   :  { %1901 = vmatprep.subr.bf16.mxu0 %v2075_v62  ;;  %1894 = vmatpush3.bf16.msra.mxu1 %v2074_v59 }
  0x62   :  { %1923 = vmatprep.subr.bf16.mxu1 %v2076_v63 }
  0x63   :  { %1364 = vmatmul.mubr.bf16.vlgmr.msra.gmra.mxu0 %v361_v61 }
  0x64   :  { %1902 = vmatpush3.bf16.msra.mxu0 %v2077_v1  ;;  %1443 = vmatprep.mubr.bf16.mxu0 %v382_v0 }
  0x65   :  { %1404 = vmatmul.mubr.bf16.vlgmr.msra.gmra.mxu1 %v383_v3  ;;  %1903 = vmatprep.subr.bf16.mxu0 %v2079_v4 }
  0x66   :  { %1924 = vmatpush3.bf16.msra.mxu1 %v2078_v2  ;;  %1483 = vmatprep.mubr.bf16.mxu1 %v386_v6 }
  0x67   :  { %1925 = vmatprep.subr.bf16.mxu1 %v2080_v5 }
  0x68   :  { %1904 = vmatpush3.bf16.msra.mxu0 %v2081_v7 }
  0x69   :  { %1905 = vmatprep.subr.bf16.mxu0 %v2083_v9 }
  0x6a   :  { %1926 = vmatpush3.bf16.msra.mxu1 %v2082_v8 }
  0x6b   :  { %1927 = vmatprep.subr.bf16.mxu1 %v2084_v10 }
  0x6c   :  { %1906 = vmatpush3.bf16.msra.mxu0 %v2085_v11 }
  0x6d   :  { %1907 = vmatprep.subr.bf16.mxu0 %v2087_v13 }
  0x6e   :  { %1928 = vmatpush3.bf16.msra.mxu1 %v2086_v12 }
  0x6f   :  { %1929 = vmatprep.subr.bf16.mxu1 %v2088_v14 }
  0x70   :  { %1908 = vmatpush3.bf16.msra.mxu0 %v2089_v15 }
  0x71   :  { %1909 = vmatprep.subr.bf16.mxu0 %v2091_v17 }
  0x72   :  { %1930 = vmatpush3.bf16.msra.mxu1 %v2090_v16 }
  0x73   :  { %1931 = vmatprep.subr.bf16.mxu1 %v2092_v18 }
  0x74   :  { %1910 = vmatpush3.bf16.msra.mxu0 %v2093_v19 }
  0x75   :  { %1911 = vmatprep.subr.bf16.mxu0 %v2095_v21 }
  0x76   :  { %1932 = vmatpush3.bf16.msra.mxu1 %v2094_v20 }
  0x77   :  { %1933 = vmatprep.subr.bf16.mxu1 %v2096_v22 }
  0x78   :  { %1912 = vmatpush3.bf16.msra.mxu0 %v2097_v23 }
  0x79   :  { %1913 = vmatprep.subr.bf16.mxu0 %v2099_v25 }
  0x7a   :  { %1934 = vmatpush3.bf16.msra.mxu1 %v2098_v24 }
  0x7b   :  { %1935 = vmatprep.subr.bf16.mxu1 %v2100_v26 }
  0x7c   :  { %10 = vsyncpa [#allocation3], 0  ;;  %1914 = vmatpush3.bf16.msra.mxu0 %v2101_v27  ;;  %v2105_v31 = vld [vmem:[%s2624_s1 + $0x300] sm:$0xff]   ;;  %v368_v32 = vrot.slane %v2473_v53, %v2281_v41  ;;  %v2108_v35 = vld [vmem:[%s2626_s3 + $0x38] sm:$0xff]   ;;  %v2143_v36 = vmov 0.0   ;;  %vm2144_vm0 = vmmov 0  }
  0x7d   :  { %1915 = vmatprep.subr.bf16.mxu0 %v2103_v28  ;;  %v2106_v33 = vld [vmem:[%s2624_s1 + $0x380] sm:$0xff]   ;;  %v2109_v41 = vld [vmem:[%s2626_s3 + $0x30] sm:$0xff]   ;;  %v2110_v37 = vld [vmem:[%s2626_s3 + $0x28] sm:$0xff]   ;;  %vm1604_vm1 = vcmask 1041408   ;;  %s2145_s16 = smov [#allocation2]  }
  0x7e   :  { %1936 = vmatpush3.bf16.msra.mxu1 %v2102_v29  ;;  %v384_v34 = vcombine.high %v368_v32, %v368_v32  ;;  %v2111_v38 = vld [vmem:[%s2626_s3 + $0x20] sm:$0xff]   ;;  %v2112_v39 = vld [vmem:[%s2626_s3 + $0x18] sm:$0xff]   ;;  %v2113_v40 = vld [vmem:[%s2626_s3 + $0x10] sm:$0xff]   ;;  %s1623_s17 = sshll.u32 %s2145_s16, 4  ;;  %s1624_s17 = int_to_ptr.vmem [resolvable:$true] %s1623_s17 }
  0x7f   :  { %1937 = vmatprep.subr.bf16.mxu1 %v2104_v30  ;;  %v2114_v42 = vld [vmem:[%s2626_s3 + $0x8] sm:$0xff]   ;;  %v2115_v43 = vld [vmem:[%s2626_s3] sm:$0xff]   ;;  %p2125_p1 = scmp.lt.s32.totalorder %s1624_s17, %s1624_s17 }
  0x80   :  { %1916 = vmatpush3.bf16.msra.mxu0 %v2105_v31  ;;  %v1631_v46 = vld [vmem:[%s2625_s2] ss:$0 sm:$0xff] }
  0x81   :  { %1954 = vmatprep.subr.bf16.mxu0 %v2143_v36  ;;  %v1760_v31 = vld [vmem:[%s2627_s4] ss:$0 sm:$0xff]  ;;  %s2120_s4 = scalar_lea.vmem %s1624_s17, 32 }
  0x82   :  { %1938 = vmatpush3.bf16.msra.mxu1 %v2106_v33  ;;  %p2121_p0 = scmp.ne.s32.totalorder %s1624_s17, %s2120_s4  ;;  %p2126_p2 = scmp.lt.s32.totalorder %s2120_s4, %s2120_s4 }
  0x83   :  { %1444 = vmatmul.mubr.bf16.vlgmr.msra.gmra.mxu0 %v368_v32 }
  0x84   :  { %1955 = vmatpush3.bf16.msra.mxu0 %v2108_v35  ;;  %1970 = vmatprep.mubr.msk.bf16.mxu0 %vm2144_vm0, %v2143_v36  ;;  %p2127_p3 = por %p2126_p2, %p2125_p1 }
  0x85   :  { %1484 = vmatmul.mubr.bf16.vlgmr.msra.gmra.mxu1 %v384_v34  ;;  %1956 = vmatprep.subr.bf16.mxu0 %v2143_v36 }
  0x86   :  { %p2128_p4 = pnand %p2127_p3, %p2121_p0 }
  0x88   :  { %1957 = vmatpush3.bf16.msra.mxu0 %v2109_v41 }
  0x89   :  { %1958 = vmatprep.subr.bf16.mxu0 %v2143_v36 }
  0x8c   :  { %1959 = vmatpush3.bf16.msra.mxu0 %v2110_v37 }
  0x8d   :  { %1960 = vmatprep.subr.bf16.mxu0 %v2143_v36 }
  0x90   :  { %1961 = vmatpush3.bf16.msra.mxu0 %v2111_v38 }
  0x91   :  { %1962 = vmatprep.subr.bf16.mxu0 %v2143_v36 }
  0x94   :  { %1963 = vmatpush3.bf16.msra.mxu0 %v2112_v39 }
  0x95   :  { %1964 = vmatprep.subr.bf16.mxu0 %v2143_v36 }
  0x98   :  { %1965 = vmatpush3.bf16.msra.mxu0 %v2113_v40 }
  0x99   :  { %1966 = vmatprep.subr.bf16.mxu0 %v2143_v36 }
  0x9c   :  { %1967 = vmatpush3.bf16.msra.mxu0 %v2114_v42 }
  0x9d   :  { %1968 = vmatprep.subr.bf16.mxu0 %v2143_v36 }
  0xa0   :  { %1969 = vmatpush3.bf16.msra.mxu0 %v2115_v43 }
  0xe3   :  { %v1785_v44 = vpop.f32.mrf.mxu0 }
  0xe4   :  { %v1807_v45 = vpop.f32.mrf.mxu1 }
  0xe5   :  { %v1786_v47 = vpop.f32.mrf.mxu0 }
  0xe6   :  { %v1787_v48 = vadd.f32 %v1786_v47, %v1785_v44  ;;  %v1808_v49 = vpop.f32.mrf.mxu1 }
  0xe7   :  { %v1788_v50 = vpop.f32.mrf.mxu0  ;;  %v1809_v52 = vadd.f32 %v1808_v49, %v1807_v45 }
  0xe8   :  { %v1206_v51 = vadd.f32 %v1787_v48, %v1631_v46  ;;  %v1810_v53 = vpop.f32.mrf.mxu1 }
  0xe9   :  { %v1789_v54 = vpop.f32.mrf.mxu0 }
  0xea   :  { %v1246_v55 = vadd.f32 %v1809_v52, %v1206_v51  ;;  %v1811_v56 = vpop.f32.mrf.mxu1 }
 0x103   :  { %v1829_v57 = vpop.f32.mrf.mxu0 }
 0x104   :  { %v1851_v58 = vpop.f32.mrf.mxu1 }
 0x105   :  { %v1830_v59 = vpop.f32.mrf.mxu0 }
 0x106   :  { %v1852_v60 = vpop.f32.mrf.mxu1  ;;  %v1831_v9 = vadd.f32 %v1830_v59, %v1829_v57 }
 0x107   :  { %v1832_v61 = vpop.f32.mrf.mxu0  ;;  %v1853_v11 = vadd.f32 %v1852_v60, %v1851_v58 }
 0x108   :  { %v1854_v62 = vpop.f32.mrf.mxu1  ;;  %v1286_v10 = vadd.f32 %v1831_v9, %v1246_v55 }
 0x109   :  { %v1833_v63 = vpop.f32.mrf.mxu0 }
 0x10a   :  { %v1855_v0 = vpop.f32.mrf.mxu1  ;;  %v1326_v13 = vadd.f32 %v1853_v11, %v1286_v10 }
 0x123   :  { %v1873_v1 = vpop.f32.mrf.mxu0 }
 0x125   :  { %v1895_v2 = vpop.f32.mrf.mxu1  ;;  %v1874_v3 = vpop.f32.mrf.mxu0 }
 0x126   :  { %v1875_v12 = vadd.f32 %v1874_v3, %v1873_v1 }
 0x127   :  { %v1896_v4 = vpop.f32.mrf.mxu1  ;;  %v1876_v5 = vpop.f32.mrf.mxu0 }
 0x128   :  { %v1366_v14 = vadd.f32 %v1875_v12, %v1326_v13  ;;  %v1897_v15 = vadd.f32 %v1896_v4, %v1895_v2 }
 0x129   :  { %v1898_v6 = vpop.f32.mrf.mxu1  ;;  %v1877_v7 = vpop.f32.mrf.mxu0 }
 0x12a   :  { %v1406_v19 = vadd.f32 %v1897_v15, %v1366_v14 }
 0x12b   :  { %v1899_v8 = vpop.f32.mrf.mxu1 }
 0x143   :  { %v1917_v16 = vpop.f32.mrf.mxu0 }
 0x145   :  { %v1939_v17 = vpop.f32.mrf.mxu1  ;;  %v1918_v18 = vpop.f32.mrf.mxu0 }
 0x146   :  { %v1919_v20 = vadd.f32 %v1918_v18, %v1917_v16 }
 0x147   :  { %v1940_v21 = vpop.f32.mrf.mxu1  ;;  %v1920_v22 = vpop.f32.mrf.mxu0 }
 0x148   :  { %v1446_v23 = vadd.f32 %v1919_v20, %v1406_v19  ;;  %v1941_v24 = vadd.f32 %v1940_v21, %v1939_v17 }
 0x149   :  { %v1942_v25 = vpop.f32.mrf.mxu1  ;;  %v1921_v26 = vpop.f32.mrf.mxu0 }
 0x14a   :  { %v1486_v27 = vadd.f32 %v1941_v24, %v1446_v23 }
 0x14b   :  { %v1943_v28 = vpop.f32.mrf.mxu1 }
 0x14c   :  { %v1491_v29 = vmax.f32 %v1486_v27, 0.0 }
 0x14e   :  { %v1492_v30 = vpack.c.bf16 %v1491_v29, %v1491_v29 }
 0x150   :  { %1971 = vmatmul.mubr.bf16.vlgmr.msra.gmra.mxu0 %v1492_v30 }
 0x210   :  { %v1598_v32 = vpop.f32.mrf.mxu0 }
 0x211   :  { %v1599_v33 = vadd.f32 %v1760_v31, %v1598_v32 }
 0x212   :  { %v1972_v34 = vpop.f32.mrf.mxu0 }
 0x213   :  { %v1605_v35 = vsel %vm1604_vm1, %v1599_v33, -inf }
 0x214   :  { %1606 = vmax.xlane.f32.xlu0 %v1605_v35  ;;  %v1601_v36 = vpop.f32.mrf.mxu0 }
 0x216   :  { %v1973_v41 = vpop.f32.mrf.mxu0 }
 0x29d   :  { %v1607_v37 = vpop.xlane.xlu0 %1606 }
 0x29e   :  { %v1608_v38 = vsub.f32 %v1599_v33, %v1607_v37 }
 0x2a0   :  { %v1609_v39 = vmul.f32 1.442695, %v1608_v38 }
 0x2a2   :  { %2116 = vpow2.f32 %v1609_v39 }
 0x2af   :  { %v2117_v40 = vpop.eup %2116 }
 0x2b0   :  { %v1611_v42 = vsel %vm1604_vm1, %v2117_v40, 0.0 }
 0x2b1   :  { %1612 = vadd.xlane.f32.xlu0 %v1611_v42 }
 0x33a   :  { %v1613_v43 = vpop.xlane.xlu0 %1612 }
 0x33b   :  { %2118 = vrcp.f32 %v1613_v43 }
 0x348   :  { %v2119_v44 = vpop.eup %2118 }
 0x349   :  { %v1615_v45 = vmul.f32 %v2119_v44, %v2117_v40 }
 0x34b   :  { %1616 = vst [vmem:[#allocation2] sm:$0x3] %v1615_v45 }
 0x34c   :  { %2131 = shalt.err (!%p2128_p4)
}
 0x34d   :  { %1626 = dma.vmem_to_hbm [thread:$0]  %s1624_s17, 32, %s2628_s5, [#allocation3]  }
 0x34e   :  { %2140 = dma.done.wait [#allocation3], 32  }
 0x34f   :  { %2141 = vsyncadd [#allocation3], 4294967264 }
 0x350   :  { %1630 = vsyncpa [#allocation3], 1 }

</bundles_post_ra>
